<compile_context>
chip_gen: v6e
topology: v6e:2x2x1
jax: 0.10.0
libtpu: 0.0.40
codegen_flags: <defaults>
</compile_context>

<pallas_src>
import jax
import jax.numpy as jnp
from jax.experimental import pallas as pl
from jax.experimental.pallas import tpu as pltpu


def _round_up(n, m):
    return (n + m - 1) // m * m


def _critic_kernel(x_ref, a_ref,
                   w1x_ref, w1a_ref, b1_ref,
                   w2_ref, b2_ref,
                   w3_ref, b3_ref,
                   w4_ref, b4_ref,
                   o_ref):
    """One batch tile of the full 4-layer MLP (weights are VMEM-resident)."""
    wdt = w2_ref.dtype  # MXU input dtype (bf16 by default, f32 optional)
    # fc1, with the concat fused as two matmuls (1/max_action folded into w1a).
    h = (jnp.dot(x_ref[...].astype(wdt), w1x_ref[...],
                 preferred_element_type=jnp.float32)
         + jnp.dot(a_ref[...].astype(wdt), w1a_ref[...],
                   preferred_element_type=jnp.float32)
         + b1_ref[...])
    h = jnp.maximum(h, 0.0)
    h = jnp.dot(h.astype(wdt), w2_ref[...],
                preferred_element_type=jnp.float32) + b2_ref[...]
    h = jnp.maximum(h, 0.0)
    h = jnp.dot(h.astype(wdt), w3_ref[...],
                preferred_element_type=jnp.float32) + b3_ref[...]
    h = jnp.maximum(h, 0.0)
    q = jnp.dot(h.astype(wdt), w4_ref[...],
                preferred_element_type=jnp.float32) + b4_ref[...]
    o_ref[...] = q.astype(o_ref.dtype)


def _pick_batch_tile(B, tile_b):
    """Batch tile: big (amortize ~0.35us/step), 256-aligned when large, and
    guaranteeing >= 2 grid steps when the batch is large enough (v7x has two
    TensorCores sharing the 'parallel' batch axis)."""
    bp = _round_up(B, 8)
    tb = min(_round_up(max(tile_b, 8), 8), bp)
    if bp >= 512 and 2 * tb > bp:          # make both v7x TCs do useful work
        tb = _round_up(bp // 2, 8)
    if tb >= 512:                           # align to the 256-wide MXU
        tb = (tb // 256) * 256
    return tb


def critic_forward(x, actions, params, max_action, *,
                   tile_b=1024, param_dtype=jnp.bfloat16,
                   single_buffer_weights=True):
    """Forward pass of `critic`.

    x:        (B, obs + goal) float32
    actions:  (B, action)     float32
    params:   ((w1,b1),(w2,b2),(w3,b3),(w4,b4)), weights stored (in, out),
              biases (1, out), all float32.
    returns:  (B, num_reward) float32
    """
    (w1, b1), (w2, b2), (w3, b3), (w4, b4) = params
    B, Dx = x.shape
    Da = actions.shape[1]
    H = w1.shape[1]
    num_reward = w4.shape[1]

    # --- fold the concat + action normalization into fc1 ---------------------
    # (a / m) @ W_a == a @ (W_a / m): split w1, scale the action rows.
    w1x = w1[:Dx, :]
    w1a = w1[Dx:, :] / jnp.float32(max_action)

    # --- narrow output padding (sublane multiple of 8, NOT 128) --------------
    n_out = _round_up(max(num_reward, 1), 8)
    w4p = jnp.zeros((H, n_out), jnp.float32).at[:, :num_reward].set(w4)
    b4p = jnp.zeros((1, n_out), jnp.float32).at[:, :num_reward].set(b4)

    # --- cast weights to the MXU input dtype (biases stay f32) ---------------
    w1x, w1a, w2c, w3c, w4p = (w.astype(param_dtype)
                               for w in (w1x, w1a, w2, w3, w4p))
    b1f, b2f, b3f, b4f = (b.astype(jnp.float32) for b in (b1, b2, b3, b4p))

    # --- batch tiling ---------------------------------------------------------
    TB = _pick_batch_tile(B, tile_b)
    B_pad = _round_up(B, TB)
    if B_pad != B:
        x = jnp.pad(x, ((0, B_pad - B), (0, 0)))
        actions = jnp.pad(actions, ((0, B_pad - B), (0, 0)))
    grid = (B_pad // TB,)

    def batch_spec(f):
        return pl.BlockSpec((TB, f), lambda i: (i, 0))

    def make_call(weight_pipeline_mode):
        def resident_spec(arr):
            # Constant block index => weight/bias DMA'd into VMEM once and
            # reused across all batch-grid steps.
            kwargs = {}
            if weight_pipeline_mode is not None:
                kwargs["pipeline_mode"] = weight_pipeline_mode
            return pl.BlockSpec(arr.shape, lambda i: (0, 0), **kwargs)

        return pl.pallas_call(
            _critic_kernel,
            out_shape=jax.ShapeDtypeStruct((B_pad, n_out), jnp.float32),
            grid=grid,
            in_specs=[
                batch_spec(Dx), batch_spec(Da),
                resident_spec(w1x), resident_spec(w1a), resident_spec(b1f),
                resident_spec(w2c), resident_spec(b2f),
                resident_spec(w3c), resident_spec(b3f),
                resident_spec(w4p), resident_spec(b4f),
            ],
            out_specs=batch_spec(n_out),
            compiler_params=pltpu.CompilerParams(
                dimension_semantics=("parallel",),   # megacore across batch
                vmem_limit_bytes=48 * 1024 * 1024,   # headroom for TB up to 2048
            ),
        )

    args = (x, actions, w1x, w1a, b1f, w2c, b2f, w3c, b3f, w4p, b4f)
    if single_buffer_weights:
        try:
            # Resident weights never change block -> single-buffer them.
            out = make_call(pl.Buffered(1))(*args)
        except Exception:
            out = make_call(None)(*args)   # fall back to default buffering
    else:
        out = make_call(None)(*args)

    return out[:B, :num_reward]


def init_linear(key, in_dim, out_dim):
    """Matches torch.nn.Linear default init U(-1/sqrt(in), 1/sqrt(in)).

    Weight stored transposed (in_dim, out_dim); bias (1, out_dim).
    """
    kw, kb = jax.random.split(key)
    bound = 1.0 / jnp.sqrt(jnp.float32(in_dim))
    w = jax.random.uniform(kw, (in_dim, out_dim), jnp.float32, -bound, bound)
    b = jax.random.uniform(kb, (1, out_dim), jnp.float32, -bound, bound)
    return w, b


def _reference(x, actions, params, max_action, param_dtype):
    """Pure-JAX reference with the same weight/activation dtype as the kernel."""
    xc = jnp.concatenate([x, actions / max_action], axis=1)
    h = xc
    for i, (w, b) in enumerate(params):
        h = jnp.dot(h.astype(param_dtype), w.astype(param_dtype),
                    preferred_element_type=jnp.float32) + b
        if i < 3:
            h = jnp.maximum(h, 0.0)
    return h


if __name__ == "__main__":
    env_params = dict(obs=10, goal=3, action=4, action_max=1.0,
                      num_reward=3, temp=1.0)
    in_dim = env_params['obs'] + env_params['goal'] + env_params['action']
    hidden = 256  # hardcoded in the PyTorch module

    key = jax.random.PRNGKey(0)
    k_x, k_a, k1, k2, k3, k4 = jax.random.split(key, 6)

    params = (
        init_linear(k1, in_dim, hidden),
        init_linear(k2, hidden, hidden),
        init_linear(k3, hidden, hidden),
        init_linear(k4, hidden, env_params['num_reward']),
    )

    # --- primary small-shape check (f32 weights, tight tolerance) ------------
    B = 2
    x = jax.random.normal(k_x, (B, env_params['obs'] + env_params['goal']),
                          jnp.float32)
    actions = jax.random.normal(k_a, (B, env_params['action']), jnp.float32)

    out = critic_forward(x, actions, params, env_params['action_max'],
                         param_dtype=jnp.float32)
    jax.block_until_ready(out)
    ref = _reference(x, actions, params, env_params['action_max'], jnp.float32)
    assert out.shape == (B, env_params['num_reward'])
    assert jnp.allclose(out, ref, atol=1e-4, rtol=1e-4), "f32 mismatch"

    # --- default (bf16) path: multi-tile batch grid + tail padding ------------
    B2 = 20
    x2 = jax.random.normal(jax.random.PRNGKey(1),
                           (B2, env_params['obs'] + env_params['goal']),
                           jnp.float32)
    a2 = jax.random.normal(jax.random.PRNGKey(2),
                           (B2, env_params['action']), jnp.float32)
    out2 = critic_forward(x2, a2, params, env_params['action_max'], tile_b=8)
    jax.block_until_ready(out2)
    ref2 = _reference(x2, a2, params, env_params['action_max'], jnp.bfloat16)
    assert out2.shape == (B2, env_params['num_reward'])
    assert jnp.allclose(out2, ref2, atol=2e-2, rtol=2e-2), "bf16 mismatch"

    # TODO(synk): softmin_forward / deep_forward are not part of forward();
    # softmin_forward could be fused in-kernel (jnp.exp + pl.reciprocal) later.
    print("KERNEL_OK")
</pallas_src>

<mosaic_0001>
module attributes {stable_mosaic.version = 11 : i64} {
  func.func @_critic_kernel(%arg0: i32, %arg1: memref<8x13xf32, #tpu.memory_space<vmem>>, %arg2: memref<8x4xf32, #tpu.memory_space<vmem>>, %arg3: memref<13x256xf32, #tpu.memory_space<vmem>>, %arg4: memref<4x256xf32, #tpu.memory_space<vmem>>, %arg5: memref<1x256xf32, #tpu.memory_space<vmem>>, %arg6: memref<256x256xf32, #tpu.memory_space<vmem>>, %arg7: memref<1x256xf32, #tpu.memory_space<vmem>>, %arg8: memref<256x256xf32, #tpu.memory_space<vmem>>, %arg9: memref<1x256xf32, #tpu.memory_space<vmem>>, %arg10: memref<256x8xf32, #tpu.memory_space<vmem>>, %arg11: memref<1x8xf32, #tpu.memory_space<vmem>>, %arg12: memref<8x8xf32, #tpu.memory_space<vmem>>) attributes {dimension_semantics = [#tpu.dimension_semantics<parallel>], iteration_bounds = array<i64: 1>, scalar_prefetch = 0 : i64, scratch_operands = 0 : i64, tpu.core_type = #tpu.core_type<tc>, window_params = [{transform_indices = @transform_0, window_bounds = array<i64: 8, 13>}, {transform_indices = @transform_1, window_bounds = array<i64: 8, 4>}, {pipeline_mode = #tpu.pipeline_mode<synchronous>, transform_indices = @transform_2, window_bounds = array<i64: 13, 256>}, {pipeline_mode = #tpu.pipeline_mode<synchronous>, transform_indices = @transform_3, window_bounds = array<i64: 4, 256>}, {pipeline_mode = #tpu.pipeline_mode<synchronous>, transform_indices = @transform_4, window_bounds = array<i64: 1, 256>}, {pipeline_mode = #tpu.pipeline_mode<synchronous>, transform_indices = @transform_5, window_bounds = array<i64: 256, 256>}, {pipeline_mode = #tpu.pipeline_mode<synchronous>, transform_indices = @transform_6, window_bounds = array<i64: 1, 256>}, {pipeline_mode = #tpu.pipeline_mode<synchronous>, transform_indices = @transform_7, window_bounds = array<i64: 256, 256>}, {pipeline_mode = #tpu.pipeline_mode<synchronous>, transform_indices = @transform_8, window_bounds = array<i64: 1, 256>}, {pipeline_mode = #tpu.pipeline_mode<synchronous>, transform_indices = @transform_9, window_bounds = array<i64: 256, 8>}, {pipeline_mode = #tpu.pipeline_mode<synchronous>, transform_indices = @transform_10, window_bounds = array<i64: 1, 8>}, {transform_indices = @transform_11, window_bounds = array<i64: 8, 8>}]} {
    %c0 = arith.constant 0 : index
    %c0_0 = arith.constant 0 : index
    %0 = vector.load %arg1[%c0, %c0_0] : memref<8x13xf32, #tpu.memory_space<vmem>>, vector<8x13xf32>
    %c0_1 = arith.constant 0 : index
    %c0_2 = arith.constant 0 : index
    %1 = vector.load %arg3[%c0_1, %c0_2] : memref<13x256xf32, #tpu.memory_space<vmem>>, vector<13x256xf32>
    %cst = arith.constant dense<0.000000e+00> : vector<8x256xf32>
    %2 = tpu.matmul %0, %1, %cst {dimension_numbers = #tpu.dot_dimension_numbers<[1], [0], [0], [1], [0, 0, 1, 1], [], []>} : vector<8x13xf32>, vector<13x256xf32>, vector<8x256xf32> -> vector<8x256xf32>
    %c0_3 = arith.constant 0 : index
    %c0_4 = arith.constant 0 : index
    %3 = vector.load %arg2[%c0_3, %c0_4] : memref<8x4xf32, #tpu.memory_space<vmem>>, vector<8x4xf32>
    %c0_5 = arith.constant 0 : index
    %c0_6 = arith.constant 0 : index
    %4 = vector.load %arg4[%c0_5, %c0_6] : memref<4x256xf32, #tpu.memory_space<vmem>>, vector<4x256xf32>
    %cst_7 = arith.constant dense<0.000000e+00> : vector<8x256xf32>
    %5 = tpu.matmul %3, %4, %cst_7 {dimension_numbers = #tpu.dot_dimension_numbers<[1], [0], [0], [1], [0, 0, 1, 1], [], []>} : vector<8x4xf32>, vector<4x256xf32>, vector<8x256xf32> -> vector<8x256xf32>
    %6 = arith.addf %2, %5 : vector<8x256xf32>
    %c0_8 = arith.constant 0 : index
    %c0_9 = arith.constant 0 : index
    %7 = vector.load %arg5[%c0_8, %c0_9] : memref<1x256xf32, #tpu.memory_space<vmem>>, vector<1x256xf32>
    %8 = vector.broadcast %7 : vector<1x256xf32> to vector<8x256xf32>
    %9 = arith.addf %6, %8 : vector<8x256xf32>
    %cst_10 = arith.constant 0.000000e+00 : f32
    %10 = vector.broadcast %cst_10 : f32 to vector<8x256xf32>
    %11 = arith.maximumf %9, %10 : vector<8x256xf32>
    %c0_11 = arith.constant 0 : index
    %c0_12 = arith.constant 0 : index
    %12 = vector.load %arg6[%c0_11, %c0_12] : memref<256x256xf32, #tpu.memory_space<vmem>>, vector<256x256xf32>
    %cst_13 = arith.constant dense<0.000000e+00> : vector<8x256xf32>
    %13 = tpu.matmul %11, %12, %cst_13 {dimension_numbers = #tpu.dot_dimension_numbers<[1], [0], [0], [1], [0, 0, 1, 1], [], []>} : vector<8x256xf32>, vector<256x256xf32>, vector<8x256xf32> -> vector<8x256xf32>
    %c0_14 = arith.constant 0 : index
    %c0_15 = arith.constant 0 : index
    %14 = vector.load %arg7[%c0_14, %c0_15] : memref<1x256xf32, #tpu.memory_space<vmem>>, vector<1x256xf32>
    %15 = vector.broadcast %14 : vector<1x256xf32> to vector<8x256xf32>
    %16 = arith.addf %13, %15 : vector<8x256xf32>
    %cst_16 = arith.constant 0.000000e+00 : f32
    %17 = vector.broadcast %cst_16 : f32 to vector<8x256xf32>
    %18 = arith.maximumf %16, %17 : vector<8x256xf32>
    %c0_17 = arith.constant 0 : index
    %c0_18 = arith.constant 0 : index
    %19 = vector.load %arg8[%c0_17, %c0_18] : memref<256x256xf32, #tpu.memory_space<vmem>>, vector<256x256xf32>
    %cst_19 = arith.constant dense<0.000000e+00> : vector<8x256xf32>
    %20 = tpu.matmul %18, %19, %cst_19 {dimension_numbers = #tpu.dot_dimension_numbers<[1], [0], [0], [1], [0, 0, 1, 1], [], []>} : vector<8x256xf32>, vector<256x256xf32>, vector<8x256xf32> -> vector<8x256xf32>
    %c0_20 = arith.constant 0 : index
    %c0_21 = arith.constant 0 : index
    %21 = vector.load %arg9[%c0_20, %c0_21] : memref<1x256xf32, #tpu.memory_space<vmem>>, vector<1x256xf32>
    %22 = vector.broadcast %21 : vector<1x256xf32> to vector<8x256xf32>
    %23 = arith.addf %20, %22 : vector<8x256xf32>
    %cst_22 = arith.constant 0.000000e+00 : f32
    %24 = vector.broadcast %cst_22 : f32 to vector<8x256xf32>
    %25 = arith.maximumf %23, %24 : vector<8x256xf32>
    %c0_23 = arith.constant 0 : index
    %c0_24 = arith.constant 0 : index
    %26 = vector.load %arg10[%c0_23, %c0_24] : memref<256x8xf32, #tpu.memory_space<vmem>>, vector<256x8xf32>
    %cst_25 = arith.constant dense<0.000000e+00> : vector<8x8xf32>
    %27 = tpu.matmul %25, %26, %cst_25 {dimension_numbers = #tpu.dot_dimension_numbers<[1], [0], [0], [1], [0, 0, 1, 1], [], []>} : vector<8x256xf32>, vector<256x8xf32>, vector<8x8xf32> -> vector<8x8xf32>
    %c0_26 = arith.constant 0 : index
    %c0_27 = arith.constant 0 : index
    %28 = vector.load %arg11[%c0_26, %c0_27] : memref<1x8xf32, #tpu.memory_space<vmem>>, vector<1x8xf32>
    %29 = vector.broadcast %28 : vector<1x8xf32> to vector<8x8xf32>
    %30 = arith.addf %27, %29 : vector<8x8xf32>
    %c0_28 = arith.constant 0 : index
    %c0_29 = arith.constant 0 : index
    %31 = vector.load %arg12[%c0_28, %c0_29] : memref<8x8xf32, #tpu.memory_space<vmem>>, vector<8x8xf32>
    tpu.vector_store %arg12[%c0_28, %c0_29], %30 {strides = array<i32>} : memref<8x8xf32, #tpu.memory_space<vmem>>, vector<8x8xf32>,
    return
  }
  func.func @transform_0(%arg0: i32) -> (i32, i32) {
    %c0_i32 = arith.constant 0 : i32
    %c0_i32_0 = arith.constant 0 : i32
    return %arg0, %c0_i32 : i32, i32
  }
  func.func @transform_1(%arg0: i32) -> (i32, i32) {
    %c0_i32 = arith.constant 0 : i32
    %c0_i32_0 = arith.constant 0 : i32
    return %arg0, %c0_i32 : i32, i32
  }
  func.func @transform_2(%arg0: i32) -> (i32, i32) {
    %c0_i32 = arith.constant 0 : i32
    %c0_i32_0 = arith.constant 0 : i32
    %c0_i32_1 = arith.constant 0 : i32
    return %c0_i32, %c0_i32_0 : i32, i32
  }
  func.func @transform_3(%arg0: i32) -> (i32, i32) {
    %c0_i32 = arith.constant 0 : i32
    %c0_i32_0 = arith.constant 0 : i32
    %c0_i32_1 = arith.constant 0 : i32
    return %c0_i32, %c0_i32_0 : i32, i32
  }
  func.func @transform_4(%arg0: i32) -> (i32, i32) {
    %c0_i32 = arith.constant 0 : i32
    %c0_i32_0 = arith.constant 0 : i32
    %c0_i32_1 = arith.constant 0 : i32
    return %c0_i32, %c0_i32_0 : i32, i32
  }
  func.func @transform_5(%arg0: i32) -> (i32, i32) {
    %c0_i32 = arith.constant 0 : i32
    %c0_i32_0 = arith.constant 0 : i32
    %c0_i32_1 = arith.constant 0 : i32
    return %c0_i32, %c0_i32_0 : i32, i32
  }
  func.func @transform_6(%arg0: i32) -> (i32, i32) {
    %c0_i32 = arith.constant 0 : i32
    %c0_i32_0 = arith.constant 0 : i32
    %c0_i32_1 = arith.constant 0 : i32
    return %c0_i32, %c0_i32_0 : i32, i32
  }
  func.func @transform_7(%arg0: i32) -> (i32, i32) {
    %c0_i32 = arith.constant 0 : i32
    %c0_i32_0 = arith.constant 0 : i32
    %c0_i32_1 = arith.constant 0 : i32
    return %c0_i32, %c0_i32_0 : i32, i32
  }
  func.func @transform_8(%arg0: i32) -> (i32, i32) {
    %c0_i32 = arith.constant 0 : i32
    %c0_i32_0 = arith.constant 0 : i32
    %c0_i32_1 = arith.constant 0 : i32
    return %c0_i32, %c0_i32_0 : i32, i32
  }
  func.func @transform_9(%arg0: i32) -> (i32, i32) {
    %c0_i32 = arith.constant 0 : i32
    %c0_i32_0 = arith.constant 0 : i32
    %c0_i32_1 = arith.constant 0 : i32
    return %c0_i32, %c0_i32_0 : i32, i32
  }
  func.func @transform_10(%arg0: i32) -> (i32, i32) {
    %c0_i32 = arith.constant 0 : i32
    %c0_i32_0 = arith.constant 0 : i32
    %c0_i32_1 = arith.constant 0 : i32
    return %c0_i32, %c0_i32_0 : i32, i32
  }
  func.func @transform_11(%arg0: i32) -> (i32, i32) {
    %c0_i32 = arith.constant 0 : i32
    %c0_i32_0 = arith.constant 0 : i32
    return %arg0, %c0_i32 : i32, i32
  }
}

module attributes {stable_mosaic.version = 11 : i64} {
  func.func @_critic_kernel(%arg0: i32, %arg1: memref<8x13xf32, #tpu.memory_space<vmem>>, %arg2: memref<8x4xf32, #tpu.memory_space<vmem>>, %arg3: memref<13x256xf32, #tpu.memory_space<vmem>>, %arg4: memref<4x256xf32, #tpu.memory_space<vmem>>, %arg5: memref<1x256xf32, #tpu.memory_space<vmem>>, %arg6: memref<256x256xf32, #tpu.memory_space<vmem>>, %arg7: memref<1x256xf32, #tpu.memory_space<vmem>>, %arg8: memref<256x256xf32, #tpu.memory_space<vmem>>, %arg9: memref<1x256xf32, #tpu.memory_space<vmem>>, %arg10: memref<256x8xf32, #tpu.memory_space<vmem>>, %arg11: memref<1x8xf32, #tpu.memory_space<vmem>>, %arg12: memref<8x8xf32, #tpu.memory_space<vmem>>) attributes {dimension_semantics = [#tpu.dimension_semantics<parallel>], iteration_bounds = array<i64: 1>, scalar_prefetch = 0 : i64, scratch_operands = 0 : i64, tpu.core_type = #tpu.core_type<tc>, window_params = [{transform_indices = @transform_0, window_bounds = array<i64: 8, 13>}, {transform_indices = @transform_1, window_bounds = array<i64: 8, 4>}, {pipeline_mode = #tpu.pipeline_mode<synchronous>, transform_indices = @transform_2, window_bounds = array<i64: 13, 256>}, {pipeline_mode = #tpu.pipeline_mode<synchronous>, transform_indices = @transform_3, window_bounds = array<i64: 4, 256>}, {pipeline_mode = #tpu.pipeline_mode<synchronous>, transform_indices = @transform_4, window_bounds = array<i64: 1, 256>}, {pipeline_mode = #tpu.pipeline_mode<synchronous>, transform_indices = @transform_5, window_bounds = array<i64: 256, 256>}, {pipeline_mode = #tpu.pipeline_mode<synchronous>, transform_indices = @transform_6, window_bounds = array<i64: 1, 256>}, {pipeline_mode = #tpu.pipeline_mode<synchronous>, transform_indices = @transform_7, window_bounds = array<i64: 256, 256>}, {pipeline_mode = #tpu.pipeline_mode<synchronous>, transform_indices = @transform_8, window_bounds = array<i64: 1, 256>}, {pipeline_mode = #tpu.pipeline_mode<synchronous>, transform_indices = @transform_9, window_bounds = array<i64: 256, 8>}, {pipeline_mode = #tpu.pipeline_mode<synchronous>, transform_indices = @transform_10, window_bounds = array<i64: 1, 8>}, {transform_indices = @transform_11, window_bounds = array<i64: 8, 8>}]} {
    %c0 = arith.constant 0 : index
    %c0_0 = arith.constant 0 : index
    %0 = vector.load %arg1[%c0, %c0_0] : memref<8x13xf32, #tpu.memory_space<vmem>>, vector<8x13xf32>
    %c0_1 = arith.constant 0 : index
    %c0_2 = arith.constant 0 : index
    %1 = vector.load %arg3[%c0_1, %c0_2] : memref<13x256xf32, #tpu.memory_space<vmem>>, vector<13x256xf32>
    %cst = arith.constant dense<0.000000e+00> : vector<8x256xf32>
    %2 = tpu.matmul %0, %1, %cst {dimension_numbers = #tpu.dot_dimension_numbers<[1], [0], [0], [1], [0, 0, 1, 1], [], []>} : vector<8x13xf32>, vector<13x256xf32>, vector<8x256xf32> -> vector<8x256xf32>
    %c0_3 = arith.constant 0 : index
    %c0_4 = arith.constant 0 : index
    %3 = vector.load %arg2[%c0_3, %c0_4] : memref<8x4xf32, #tpu.memory_space<vmem>>, vector<8x4xf32>
    %c0_5 = arith.constant 0 : index
    %c0_6 = arith.constant 0 : index
    %4 = vector.load %arg4[%c0_5, %c0_6] : memref<4x256xf32, #tpu.memory_space<vmem>>, vector<4x256xf32>
    %cst_7 = arith.constant dense<0.000000e+00> : vector<8x256xf32>
    %5 = tpu.matmul %3, %4, %cst_7 {dimension_numbers = #tpu.dot_dimension_numbers<[1], [0], [0], [1], [0, 0, 1, 1], [], []>} : vector<8x4xf32>, vector<4x256xf32>, vector<8x256xf32> -> vector<8x256xf32>
    %6 = arith.addf %2, %5 : vector<8x256xf32>
    %c0_8 = arith.constant 0 : index
    %c0_9 = arith.constant 0 : index
    %7 = vector.load %arg5[%c0_8, %c0_9] : memref<1x256xf32, #tpu.memory_space<vmem>>, vector<1x256xf32>
    %8 = vector.broadcast %7 : vector<1x256xf32> to vector<8x256xf32>
    %9 = arith.addf %6, %8 : vector<8x256xf32>
    %cst_10 = arith.constant 0.000000e+00 : f32
    %10 = vector.broadcast %cst_10 : f32 to vector<8x256xf32>
    %11 = arith.maximumf %9, %10 : vector<8x256xf32>
    %c0_11 = arith.constant 0 : index
    %c0_12 = arith.constant 0 : index
    %12 = vector.load %arg6[%c0_11, %c0_12] : memref<256x256xf32, #tpu.memory_space<vmem>>, vector<256x256xf32>
    %cst_13 = arith.constant dense<0.000000e+00> : vector<8x256xf32>
    %13 = tpu.matmul %11, %12, %cst_13 {dimension_numbers = #tpu.dot_dimension_numbers<[1], [0], [0], [1], [0, 0, 1, 1], [], []>} : vector<8x256xf32>, vector<256x256xf32>, vector<8x256xf32> -> vector<8x256xf32>
    %c0_14 = arith.constant 0 : index
    %c0_15 = arith.constant 0 : index
    %14 = vector.load %arg7[%c0_14, %c0_15] : memref<1x256xf32, #tpu.memory_space<vmem>>, vector<1x256xf32>
    %15 = vector.broadcast %14 : vector<1x256xf32> to vector<8x256xf32>
    %16 = arith.addf %13, %15 : vector<8x256xf32>
    %cst_16 = arith.constant 0.000000e+00 : f32
    %17 = vector.broadcast %cst_16 : f32 to vector<8x256xf32>
    %18 = arith.maximumf %16, %17 : vector<8x256xf32>
    %c0_17 = arith.constant 0 : index
    %c0_18 = arith.constant 0 : index
    %19 = vector.load %arg8[%c0_17, %c0_18] : memref<256x256xf32, #tpu.memory_space<vmem>>, vector<256x256xf32>
    %cst_19 = arith.constant dense<0.000000e+00> : vector<8x256xf32>
    %20 = tpu.matmul %18, %19, %cst_19 {dimension_numbers = #tpu.dot_dimension_numbers<[1], [0], [0], [1], [0, 0, 1, 1], [], []>} : vector<8x256xf32>, vector<256x256xf32>, vector<8x256xf32> -> vector<8x256xf32>
    %c0_20 = arith.constant 0 : index
    %c0_21 = arith.constant 0 : index
    %21 = vector.load %arg9[%c0_20, %c0_21] : memref<1x256xf32, #tpu.memory_space<vmem>>, vector<1x256xf32>
    %22 = vector.broadcast %21 : vector<1x256xf32> to vector<8x256xf32>
    %23 = arith.addf %20, %22 : vector<8x256xf32>
    %cst_22 = arith.constant 0.000000e+00 : f32
    %24 = vector.broadcast %cst_22 : f32 to vector<8x256xf32>
    %25 = arith.maximumf %23, %24 : vector<8x256xf32>
    %c0_23 = arith.constant 0 : index
    %c0_24 = arith.constant 0 : index
    %26 = vector.load %arg10[%c0_23, %c0_24] : memref<256x8xf32, #tpu.memory_space<vmem>>, vector<256x8xf32>
    %cst_25 = arith.constant dense<0.000000e+00> : vector<8x8xf32>
    %27 = tpu.matmul %25, %26, %cst_25 {dimension_numbers = #tpu.dot_dimension_numbers<[1], [0], [0], [1], [0, 0, 1, 1], [], []>} : vector<8x256xf32>, vector<256x8xf32>, vector<8x8xf32> -> vector<8x8xf32>
    %c0_26 = arith.constant 0 : index
    %c0_27 = arith.constant 0 : index
    %28 = vector.load %arg11[%c0_26, %c0_27] : memref<1x8xf32, #tpu.memory_space<vmem>>, vector<1x8xf32>
    %29 = vector.broadcast %28 : vector<1x8xf32> to vector<8x8xf32>
    %30 = arith.addf %27, %29 : vector<8x8xf32>
    %c0_28 = arith.constant 0 : index
    %c0_29 = arith.constant 0 : index
    %31 = vector.load %arg12[%c0_28, %c0_29] : memref<8x8xf32, #tpu.memory_space<vmem>>, vector<8x8xf32>
    tpu.vector_store %arg12[%c0_28, %c0_29], %30 {strides = array<i32>} : memref<8x8xf32, #tpu.memory_space<vmem>>, vector<8x8xf32>,
    return
  }
  func.func @transform_0(%arg0: i32) -> (i32, i32) {
    %c0_i32 = arith.constant 0 : i32
    %c0_i32_0 = arith.constant 0 : i32
    return %arg0, %c0_i32 : i32, i32
  }
  func.func @transform_1(%arg0: i32) -> (i32, i32) {
    %c0_i32 = arith.constant 0 : i32
    %c0_i32_0 = arith.constant 0 : i32
    return %arg0, %c0_i32 : i32, i32
  }
  func.func @transform_2(%arg0: i32) -> (i32, i32) {
    %c0_i32 = arith.constant 0 : i32
    %c0_i32_0 = arith.constant 0 : i32
    %c0_i32_1 = arith.constant 0 : i32
    return %c0_i32, %c0_i32_0 : i32, i32
  }
  func.func @transform_3(%arg0: i32) -> (i32, i32) {
    %c0_i32 = arith.constant 0 : i32
    %c0_i32_0 = arith.constant 0 : i32
    %c0_i32_1 = arith.constant 0 : i32
    return %c0_i32, %c0_i32_0 : i32, i32
  }
  func.func @transform_4(%arg0: i32) -> (i32, i32) {
    %c0_i32 = arith.constant 0 : i32
    %c0_i32_0 = arith.constant 0 : i32
    %c0_i32_1 = arith.constant 0 : i32
    return %c0_i32, %c0_i32_0 : i32, i32
  }
  func.func @transform_5(%arg0: i32) -> (i32, i32) {
    %c0_i32 = arith.constant 0 : i32
    %c0_i32_0 = arith.constant 0 : i32
    %c0_i32_1 = arith.constant 0 : i32
    return %c0_i32, %c0_i32_0 : i32, i32
  }
  func.func @transform_6(%arg0: i32) -> (i32, i32) {
    %c0_i32 = arith.constant 0 : i32
    %c0_i32_0 = arith.constant 0 : i32
    %c0_i32_1 = arith.constant 0 : i32
    return %c0_i32, %c0_i32_0 : i32, i32
  }
  func.func @transform_7(%arg0: i32) -> (i32, i32) {
    %c0_i32 = arith.constant 0 : i32
    %c0_i32_0 = arith.constant 0 : i32
    %c0_i32_1 = arith.constant 0 : i32
    return %c0_i32, %c0_i32_0 : i32, i32
  }
  func.func @transform_8(%arg0: i32) -> (i32, i32) {
    %c0_i32 = arith.constant 0 : i32
    %c0_i32_0 = arith.constant 0 : i32
    %c0_i32_1 = arith.constant 0 : i32
    return %c0_i32, %c0_i32_0 : i32, i32
  }
  func.func @transform_9(%arg0: i32) -> (i32, i32) {
    %c0_i32 = arith.constant 0 : i32
    %c0_i32_0 = arith.constant 0 : i32
    %c0_i32_1 = arith.constant 0 : i32
    return %c0_i32, %c0_i32_0 : i32, i32
  }
  func.func @transform_10(%arg0: i32) -> (i32, i32) {
    %c0_i32 = arith.constant 0 : i32
    %c0_i32_0 = arith.constant 0 : i32
    %c0_i32_1 = arith.constant 0 : i32
    return %c0_i32, %c0_i32_0 : i32, i32
  }
  func.func @transform_11(%arg0: i32) -> (i32, i32) {
    %c0_i32 = arith.constant 0 : i32
    %c0_i32_0 = arith.constant 0 : i32
    return %arg0, %c0_i32 : i32, i32
  }
}

</mosaic_0001>

<bundles_post_ra>
// kernel: tpu_custom_call.1
= control target key start
LH: loop header
LB: loop body
LE: loop exit
PB: predicated region body
PF: predicated region fallthrough
CT: control target
= control target key end

     0   :  { %16 = vsyncpa [#allocation3], 0  ;;  %s1008_s0 = inlined_call_operand.vmem [shape: f32[8,13], index: 0, kind: input, shape index: {}]   ;;  %s1009_s1 = inlined_call_operand.vmem [shape: f32[8,4], index: 1, kind: input, shape index: {}]   ;;  %s1010_s2 = inlined_call_operand.vmem [shape: f32[13,256], index: 2, kind: input, shape index: {}]   ;;  %s1011_s3 = inlined_call_operand.vmem [shape: f32[4,256], index: 3, kind: input, shape index: {}]   ;;  %s1012_s4 = inlined_call_operand.vmem [shape: f32[1,256], index: 4, kind: input, shape index: {}]   ;;  %s1013_s5 = inlined_call_operand.hbm [shape: f32[256,256], index: 5, kind: input, shape index: {}]   ;;  %s1014_s6 = inlined_call_operand.vmem [shape: f32[1,256], index: 6, kind: input, shape index: {}]   ;;  %s1015_s7 = inlined_call_operand.hbm [shape: f32[256,256], index: 7, kind: input, shape index: {}]   ;;  %s1016_s8 = inlined_call_operand.vmem [shape: f32[1,256], index: 8, kind: input, shape index: {}]   ;;  %s1017_s9 = inlined_call_operand.vmem [shape: f32[256,8], index: 9, kind: input, shape index: {}]   ;;  %s1018_s10 = inlined_call_operand.vmem [shape: f32[1,8], index: 10, kind: input, shape index: {}]   ;;  %s1019_s11 = inlined_call_operand.hbm [shape: f32[8,8], index: 11, kind: output, shape index: {}]  }
   0x1   :  { %17 = vsyncpa [#allocation6], 0 }
   0x2   :  { %18 = vsyncpa [#allocation4], 0  ;;  %s794_s17 = smov [#allocation2]  }
   0x3   :  { %s34_s18 = sshll.u32 %s794_s17, 4  ;;  %s35_s18 = int_to_ptr.vmem [resolvable:$true] %s34_s18 }
   0x4   :  { %s736_s19 = scalar_lea.vmem %s35_s18, 8192  ;;  %p741_p1 = scmp.lt.s32.totalorder %s35_s18, %s35_s18 }
   0x5   :  { %p737_p0 = scmp.ne.s32.totalorder %s35_s18, %s736_s19  ;;  %p742_p2 = scmp.lt.s32.totalorder %s736_s19, %s736_s19 }
   0x7   :  { %p743_p3 = por %p742_p2, %p741_p1 }
   0x9   :  { %p744_p4 = pnand %p743_p3, %p737_p0 }
   0xb   :  { %747 = shalt.err (!%p744_p4)
}
   0xc   :  { %s795_s20 = smov 256   ;;  %s796_s21 = smov 16  }
   0xd   :  { %40 = dma.hbm_to_vmem [thread:$0]  %s1013_s5, 8192, %s35_s18, [#allocation3], %s795_s20, %s795_s20, %s796_s21  }
   0xe   :  { %s797_s24 = smov [#allocation5]  }
   0xf   :  { %s48_s25 = sshll.u32 %s797_s24, 4  ;;  %s49_s25 = int_to_ptr.vmem [resolvable:$true] %s48_s25 }
  0x10   :  { %s756_s26 = scalar_lea.vmem %s49_s25, 8192  ;;  %p761_p6 = scmp.lt.s32.totalorder %s49_s25, %s49_s25 }
  0x11   :  { %p757_p5 = scmp.ne.s32.totalorder %s49_s25, %s756_s26  ;;  %p762_p7 = scmp.lt.s32.totalorder %s756_s26, %s756_s26 }
  0x13   :  { %p763_p8 = por %p762_p7, %p761_p6 }
  0x15   :  { %p764_p9 = pnand %p763_p8, %p757_p5 }
  0x17   :  { %767 = shalt.err (!%p764_p9)
}
  0x18   :  { %54 = dma.hbm_to_vmem [thread:$0]  %s1015_s7, 8192, %s49_s25, [#allocation6], %s795_s20, %s795_s20, %s796_s21  }
  0x19   :  { %788 = dma.done.wait [#allocation3], 8192  }
  0x1a   :  { %789 = vsyncadd [#allocation3], 4294959104 }
  0x1b   :  { %790 = dma.done.wait [#allocation6], 8192  }
  0x1c   :  { %791 = vsyncadd [#allocation6], 4294959104  ;;  %v798_v0 = vmov 0.0   ;;  %v73_v1 = vld [vmem:[%s1011_s3] sm:$0xff]  ;;  %vm80_vm0 = vcmask 1043456   ;;  %vm76_vm1 = vcmask 31744  }
  0x1d   :  { %149 = vmatprep.mubr.f32.mxu1 %v798_v0  ;;  %v75_v2 = vcombine.high %v73_v1, %v73_v1  ;;  %v72_v3 = vld [vmem:[%s1009_s1] sm:$0xff]  ;;  %v71_v4 = vld [vmem:[%s1010_s2 + $0x18] sm:$0x1f]  ;;  %vm160_vm2 = vcmask 1044480   ;;  %v284_v6 = vld [vmem:[#allocation2 + $0xf0] sm:$0xff]  ;;  %vm156_vm3 = vcmask 105472  }
  0x1e   :  { %v285_v5 = vld [vmem:[#allocation2 + $0xf8] sm:$0xff]  ;;  %v70_v7 = vld [vmem:[%s1010_s2 + $0x10] sm:$0x1f]  ;;  %v69_v8 = vld [vmem:[%s1010_s2 + $0x8] sm:$0xff]  ;;  %s799_s7 = smov [#allocation7]   ;;  %vm661_vm4 = vcmask 64512  }
  0x1f   :  { %679 = vmatprep.subr.msk.mxu1 %vm80_vm0, %v75_v2  ;;  %330 = vmatprep.subr.mxu0 %v285_v5  ;;  %v283_v9 = vld [vmem:[#allocation2 + $0xe8] sm:$0xff]  ;;  %v68_v10 = vld [vmem:[%s1010_s2] sm:$0xff]  ;;  %v281_v13 = vld [vmem:[#allocation2 + $0xd8] sm:$0xff] }
  0x20   :  { %680 = vmatpush1.msk.msra.mxu1 %vm80_vm0, %v73_v1  ;;  %331 = vmatpush1.msra.mxu0 %v284_v6  ;;  %v282_v11 = vld [vmem:[#allocation2 + $0xe0] sm:$0xff]  ;;  %v280_v14 = vld [vmem:[#allocation2 + $0xd0] sm:$0xff]  ;;  %v279_v15 = vld [vmem:[#allocation2 + $0xc8] sm:$0xff] }
  0x21   :  { %681 = vmatmul.mubr.msk.f32.vlgmr.msra.gmra.mxu1 %vm76_vm1, %v72_v3  ;;  %682 = vmatprep.subr.msk.mxu1 %vm160_vm2, %v71_v4  ;;  %v67_v12 = vld [vmem:[%s1008_s0] sm:$0xff]  ;;  %v277_v17 = vld [vmem:[#allocation2 + $0xb8] sm:$0xff]  ;;  %v276_v18 = vld [vmem:[#allocation2 + $0xb0] sm:$0xff] }
  0x22   :  { %683 = vmatpush1.msk.msra.mxu1 %vm160_vm2, %v70_v7  ;;  %231 = vmatprep.mubr.f32.mxu1 %v798_v0  ;;  %v278_v16 = vld [vmem:[#allocation2 + $0xc0] sm:$0xff]  ;;  %v275_v19 = vld [vmem:[#allocation2 + $0xa8] sm:$0xff]  ;;  %v273_v21 = vld [vmem:[#allocation2 + $0x98] sm:$0xff] }
  0x23   :  { %197 = vmatprep.subr.mxu1 %v69_v8  ;;  %332 = vmatprep.subr.mxu0 %v283_v9  ;;  %v274_v20 = vld [vmem:[#allocation2 + $0xa0] sm:$0xff]  ;;  %v272_v22 = vld [vmem:[#allocation2 + $0x90] sm:$0xff]  ;;  %v271_v23 = vld [vmem:[#allocation2 + $0x88] sm:$0xff] }
  0x24   :  { %198 = vmatpush1.msra.mxu1 %v68_v10  ;;  %333 = vmatpush1.msra.mxu0 %v282_v11  ;;  %v270_v24 = vld [vmem:[#allocation2 + $0x80] sm:$0xff]  ;;  %v269_v25 = vld [vmem:[#allocation2 + $0x78] sm:$0xff]  ;;  %v268_v26 = vld [vmem:[#allocation2 + $0x70] sm:$0xff] }
  0x25   :  { %684 = vmatmul.mubr.msk.f32.vlgmr.msra.gmra.mxu1 %vm156_vm3, %v67_v12  ;;  %334 = vmatprep.subr.mxu0 %v281_v13  ;;  %v267_v27 = vld [vmem:[#allocation2 + $0x68] sm:$0xff]  ;;  %v266_v28 = vld [vmem:[#allocation2 + $0x60] sm:$0xff]  ;;  %v265_v29 = vld [vmem:[#allocation2 + $0x58] sm:$0xff] }
  0x26   :  { %335 = vmatpush1.msra.mxu0 %v280_v14  ;;  %v264_v30 = vld [vmem:[#allocation2 + $0x50] sm:$0xff]  ;;  %v263_v31 = vld [vmem:[#allocation2 + $0x48] sm:$0xff]  ;;  %v262_v32 = vld [vmem:[#allocation2 + $0x40] sm:$0xff] }
  0x27   :  { %336 = vmatprep.subr.mxu0 %v279_v15  ;;  %v261_v33 = vld [vmem:[#allocation2 + $0x38] sm:$0xff]  ;;  %v260_v34 = vld [vmem:[#allocation2 + $0x30] sm:$0xff]  ;;  %v259_v35 = vld [vmem:[#allocation2 + $0x28] sm:$0xff] }
  0x28   :  { %337 = vmatpush1.msra.mxu0 %v278_v16  ;;  %v258_v36 = vld [vmem:[#allocation2 + $0x20] sm:$0xff]  ;;  %v257_v37 = vld [vmem:[#allocation2 + $0x18] sm:$0xff]  ;;  %v256_v38 = vld [vmem:[#allocation2 + $0x10] sm:$0xff] }
  0x29   :  { %338 = vmatprep.subr.mxu0 %v277_v17  ;;  %v255_v39 = vld [vmem:[#allocation2 + $0x8] sm:$0xff]  ;;  %v254_v40 = vld [vmem:[#allocation2] sm:$0xff]  ;;  %v317_v41 = vld [vmem:[#allocation2 + $0x1f8] sm:$0xff] }
  0x2a   :  { %339 = vmatpush1.msra.mxu0 %v276_v18  ;;  %v316_v42 = vld [vmem:[#allocation2 + $0x1f0] sm:$0xff]  ;;  %v315_v43 = vld [vmem:[#allocation2 + $0x1e8] sm:$0xff]  ;;  %v314_v44 = vld [vmem:[#allocation2 + $0x1e0] sm:$0xff] }
  0x2b   :  { %340 = vmatprep.subr.mxu0 %v275_v19  ;;  %v313_v45 = vld [vmem:[#allocation2 + $0x1d8] sm:$0xff]  ;;  %v312_v46 = vld [vmem:[#allocation2 + $0x1d0] sm:$0xff]  ;;  %v311_v47 = vld [vmem:[#allocation2 + $0x1c8] sm:$0xff] }
  0x2c   :  { %341 = vmatpush1.msra.mxu0 %v274_v20  ;;  %v310_v48 = vld [vmem:[#allocation2 + $0x1c0] sm:$0xff]  ;;  %v309_v49 = vld [vmem:[#allocation2 + $0x1b8] sm:$0xff]  ;;  %v308_v50 = vld [vmem:[#allocation2 + $0x1b0] sm:$0xff] }
  0x2d   :  { %342 = vmatprep.subr.mxu0 %v273_v21  ;;  %v307_v51 = vld [vmem:[#allocation2 + $0x1a8] sm:$0xff]  ;;  %v306_v52 = vld [vmem:[#allocation2 + $0x1a0] sm:$0xff]  ;;  %v305_v53 = vld [vmem:[#allocation2 + $0x198] sm:$0xff] }
  0x2e   :  { %343 = vmatpush1.msra.mxu0 %v272_v22  ;;  %v304_v54 = vld [vmem:[#allocation2 + $0x190] sm:$0xff]  ;;  %v303_v55 = vld [vmem:[#allocation2 + $0x188] sm:$0xff]  ;;  %v302_v56 = vld [vmem:[#allocation2 + $0x180] sm:$0xff] }
  0x2f   :  { %344 = vmatprep.subr.mxu0 %v271_v23  ;;  %v301_v57 = vld [vmem:[#allocation2 + $0x178] sm:$0xff]  ;;  %v300_v58 = vld [vmem:[#allocation2 + $0x170] sm:$0xff]  ;;  %v299_v59 = vld [vmem:[#allocation2 + $0x168] sm:$0xff] }
  0x30   :  { %345 = vmatpush1.msra.mxu0 %v270_v24  ;;  %v298_v60 = vld [vmem:[#allocation2 + $0x160] sm:$0xff]  ;;  %v297_v61 = vld [vmem:[#allocation2 + $0x158] sm:$0xff]  ;;  %v296_v62 = vld [vmem:[#allocation2 + $0x150] sm:$0xff] }
  0x31   :  { %346 = vmatprep.subr.mxu0 %v269_v25  ;;  %v295_v63 = vld [vmem:[#allocation2 + $0x148] sm:$0xff]  ;;  %v294_v0 = vld [vmem:[#allocation2 + $0x140] sm:$0xff]  ;;  %v293_v1 = vld [vmem:[#allocation2 + $0x138] sm:$0xff] }
  0x32   :  { %347 = vmatpush1.msra.mxu0 %v268_v26  ;;  %v292_v2 = vld [vmem:[#allocation2 + $0x130] sm:$0xff]  ;;  %v291_v3 = vld [vmem:[#allocation2 + $0x128] sm:$0xff]  ;;  %v290_v4 = vld [vmem:[#allocation2 + $0x120] sm:$0xff] }
  0x33   :  { %348 = vmatprep.subr.mxu0 %v267_v27  ;;  %v289_v5 = vld [vmem:[#allocation2 + $0x118] sm:$0xff]  ;;  %v288_v6 = vld [vmem:[#allocation2 + $0x110] sm:$0xff]  ;;  %v287_v7 = vld [vmem:[#allocation2 + $0x108] sm:$0xff] }
  0x34   :  { %349 = vmatpush1.msra.mxu0 %v266_v28  ;;  %v286_v8 = vld [vmem:[#allocation2 + $0x100] sm:$0xff]  ;;  %v434_v9 = vld [vmem:[#allocation5 + $0xf8] sm:$0xff]  ;;  %v433_v10 = vld [vmem:[#allocation5 + $0xf0] sm:$0xff] }
  0x35   :  { %350 = vmatprep.subr.mxu0 %v265_v29  ;;  %v432_v11 = vld [vmem:[#allocation5 + $0xe8] sm:$0xff]  ;;  %479 = vmatprep.subr.mxu1 %v434_v9  ;;  %v431_v12 = vld [vmem:[#allocation5 + $0xe0] sm:$0xff]  ;;  %v430_v13 = vld [vmem:[#allocation5 + $0xd8] sm:$0xff] }
  0x36   :  { %351 = vmatpush1.msra.mxu0 %v264_v30  ;;  %480 = vmatpush1.msra.mxu1 %v433_v10  ;;  %v429_v14 = vld [vmem:[#allocation5 + $0xd0] sm:$0xff]  ;;  %v428_v15 = vld [vmem:[#allocation5 + $0xc8] sm:$0xff]  ;;  %v427_v16 = vld [vmem:[#allocation5 + $0xc0] sm:$0xff] }
  0x37   :  { %352 = vmatprep.subr.mxu0 %v263_v31  ;;  %481 = vmatprep.subr.mxu1 %v432_v11  ;;  %v426_v17 = vld [vmem:[#allocation5 + $0xb8] sm:$0xff]  ;;  %v425_v18 = vld [vmem:[#allocation5 + $0xb0] sm:$0xff]  ;;  %v424_v19 = vld [vmem:[#allocation5 + $0xa8] sm:$0xff] }
  0x38   :  { %353 = vmatpush1.msra.mxu0 %v262_v32  ;;  %482 = vmatpush1.msra.mxu1 %v431_v12  ;;  %v423_v20 = vld [vmem:[#allocation5 + $0xa0] sm:$0xff]  ;;  %v422_v21 = vld [vmem:[#allocation5 + $0x98] sm:$0xff]  ;;  %v421_v22 = vld [vmem:[#allocation5 + $0x90] sm:$0xff] }
  0x39   :  { %354 = vmatprep.subr.mxu0 %v261_v33  ;;  %483 = vmatprep.subr.mxu1 %v430_v13  ;;  %v420_v23 = vld [vmem:[#allocation5 + $0x88] sm:$0xff]  ;;  %v419_v24 = vld [vmem:[#allocation5 + $0x80] sm:$0xff]  ;;  %v418_v25 = vld [vmem:[#allocation5 + $0x78] sm:$0xff] }
  0x3a   :  { %355 = vmatpush1.msra.mxu0 %v260_v34  ;;  %484 = vmatpush1.msra.mxu1 %v429_v14  ;;  %v417_v26 = vld [vmem:[#allocation5 + $0x70] sm:$0xff]  ;;  %v416_v27 = vld [vmem:[#allocation5 + $0x68] sm:$0xff]  ;;  %v415_v28 = vld [vmem:[#allocation5 + $0x60] sm:$0xff] }
  0x3b   :  { %356 = vmatprep.subr.mxu0 %v259_v35  ;;  %485 = vmatprep.subr.mxu1 %v428_v15  ;;  %v414_v29 = vld [vmem:[#allocation5 + $0x58] sm:$0xff]  ;;  %v413_v30 = vld [vmem:[#allocation5 + $0x50] sm:$0xff]  ;;  %v412_v31 = vld [vmem:[#allocation5 + $0x48] sm:$0xff] }
  0x3c   :  { %357 = vmatpush1.msra.mxu0 %v258_v36  ;;  %486 = vmatpush1.msra.mxu1 %v427_v16  ;;  %v411_v32 = vld [vmem:[#allocation5 + $0x40] sm:$0xff]  ;;  %v410_v33 = vld [vmem:[#allocation5 + $0x38] sm:$0xff]  ;;  %v409_v34 = vld [vmem:[#allocation5 + $0x30] sm:$0xff] }
  0x3d   :  { %358 = vmatprep.subr.mxu0 %v257_v37  ;;  %487 = vmatprep.subr.mxu1 %v426_v17  ;;  %v408_v35 = vld [vmem:[#allocation5 + $0x28] sm:$0xff]  ;;  %v407_v36 = vld [vmem:[#allocation5 + $0x20] sm:$0xff]  ;;  %v406_v37 = vld [vmem:[#allocation5 + $0x18] sm:$0xff] }
  0x3e   :  { %359 = vmatpush1.msra.mxu0 %v256_v38  ;;  %488 = vmatpush1.msra.mxu1 %v425_v18  ;;  %v405_v38 = vld [vmem:[#allocation5 + $0x10] sm:$0xff]  ;;  %v442_v18 = vld [vmem:[#allocation5 + $0x138] sm:$0xff] }
  0x3f   :  { %360 = vmatprep.subr.mxu0 %v255_v39  ;;  %489 = vmatprep.subr.mxu1 %v424_v19  ;;  %v404_v39 = vld [vmem:[#allocation5 + $0x8] sm:$0xff]  ;;  %v441_v19 = vld [vmem:[#allocation5 + $0x130] sm:$0xff] }
  0x40   :  { %361 = vmatpush1.msra.mxu0 %v254_v40  ;;  %490 = vmatpush1.msra.mxu1 %v423_v20  ;;  %v403_v40 = vld [vmem:[#allocation5] sm:$0xff]  ;;  %v440_v20 = vld [vmem:[#allocation5 + $0x128] sm:$0xff] }
  0x41   :  { %362 = vmatprep.subr.mxu0 %v317_v41  ;;  %491 = vmatprep.subr.mxu1 %v422_v21  ;;  %v466_v41 = vld [vmem:[#allocation5 + $0x1f8] sm:$0xff]  ;;  %v439_v21 = vld [vmem:[#allocation5 + $0x120] sm:$0xff] }
  0x42   :  { %363 = vmatpush2.msra.mxu0 %v316_v42  ;;  %492 = vmatpush1.msra.mxu1 %v421_v22  ;;  %v465_v42 = vld [vmem:[#allocation5 + $0x1f0] sm:$0xff]  ;;  %v438_v22 = vld [vmem:[#allocation5 + $0x118] sm:$0xff] }
  0x43   :  { %364 = vmatprep.subr.mxu0 %v315_v43  ;;  %493 = vmatprep.subr.mxu1 %v420_v23  ;;  %v464_v43 = vld [vmem:[#allocation5 + $0x1e8] sm:$0xff]  ;;  %v437_v23 = vld [vmem:[#allocation5 + $0x110] sm:$0xff] }
  0x44   :  { %365 = vmatpush2.msra.mxu0 %v314_v44  ;;  %494 = vmatpush1.msra.mxu1 %v419_v24  ;;  %v463_v44 = vld [vmem:[#allocation5 + $0x1e0] sm:$0xff]  ;;  %v436_v24 = vld [vmem:[#allocation5 + $0x108] sm:$0xff] }
  0x45   :  { %366 = vmatprep.subr.mxu0 %v313_v45  ;;  %495 = vmatprep.subr.mxu1 %v418_v25  ;;  %v462_v45 = vld [vmem:[#allocation5 + $0x1d8] sm:$0xff]  ;;  %v435_v25 = vld [vmem:[#allocation5 + $0x100] sm:$0xff] }
  0x46   :  { %367 = vmatpush2.msra.mxu0 %v312_v46  ;;  %496 = vmatpush1.msra.mxu1 %v417_v26  ;;  %v461_v46 = vld [vmem:[#allocation5 + $0x1d0] sm:$0xff]  ;;  %v583_v26 = vld [vmem:[%s1017_s9 + $0xf8] sm:$0xff] }
  0x47   :  { %368 = vmatprep.subr.mxu0 %v311_v47  ;;  %497 = vmatprep.subr.mxu1 %v416_v27  ;;  %v460_v47 = vld [vmem:[#allocation5 + $0x1c8] sm:$0xff]  ;;  %v567_v27 = vld [vmem:[%s1017_s9 + $0x78] sm:$0xff] }
  0x48   :  { %369 = vmatpush2.msra.mxu0 %v310_v48  ;;  %498 = vmatpush1.msra.mxu1 %v415_v28  ;;  %v459_v48 = vld [vmem:[#allocation5 + $0x1c0] sm:$0xff]  ;;  %v582_v28 = vld [vmem:[%s1017_s9 + $0xf0] sm:$0xff] }
  0x49   :  { %370 = vmatprep.subr.mxu0 %v309_v49  ;;  %499 = vmatprep.subr.mxu1 %v414_v29  ;;  %v458_v49 = vld [vmem:[#allocation5 + $0x1b8] sm:$0xff]  ;;  %v566_v29 = vld [vmem:[%s1017_s9 + $0x70] sm:$0xff] }
  0x4a   :  { %371 = vmatpush2.msra.mxu0 %v308_v50  ;;  %500 = vmatpush1.msra.mxu1 %v413_v30  ;;  %v457_v50 = vld [vmem:[#allocation5 + $0x1b0] sm:$0xff]  ;;  %v581_v30 = vld [vmem:[%s1017_s9 + $0xe8] sm:$0xff] }
  0x4b   :  { %372 = vmatprep.subr.mxu0 %v307_v51  ;;  %501 = vmatprep.subr.mxu1 %v412_v31  ;;  %v456_v51 = vld [vmem:[#allocation5 + $0x1a8] sm:$0xff] }
  0x4c   :  { %373 = vmatpush2.msra.mxu0 %v306_v52  ;;  %502 = vmatpush1.msra.mxu1 %v411_v32  ;;  %v455_v52 = vld [vmem:[#allocation5 + $0x1a0] sm:$0xff]  ;;  %v565_v31 = vld [vmem:[%s1017_s9 + $0x68] sm:$0xff] }
  0x4d   :  { %374 = vmatprep.subr.mxu0 %v305_v53  ;;  %503 = vmatprep.subr.mxu1 %v410_v33  ;;  %v454_v53 = vld [vmem:[#allocation5 + $0x198] sm:$0xff]  ;;  %v580_v32 = vld [vmem:[%s1017_s9 + $0xe0] sm:$0xff] }
  0x4e   :  { %375 = vmatpush2.msra.mxu0 %v304_v54  ;;  %504 = vmatpush1.msra.mxu1 %v409_v34  ;;  %v453_v54 = vld [vmem:[#allocation5 + $0x190] sm:$0xff]  ;;  %v564_v33 = vld [vmem:[%s1017_s9 + $0x60] sm:$0xff]  ;;  %v579_v34 = vld [vmem:[%s1017_s9 + $0xd8] sm:$0xff] }
  0x4f   :  { %376 = vmatprep.subr.mxu0 %v303_v55  ;;  %505 = vmatprep.subr.mxu1 %v408_v35  ;;  %v452_v55 = vld [vmem:[#allocation5 + $0x188] sm:$0xff]  ;;  %v563_v35 = vld [vmem:[%s1017_s9 + $0x58] sm:$0xff] }
  0x50   :  { %377 = vmatpush2.msra.mxu0 %v302_v56  ;;  %506 = vmatpush1.msra.mxu1 %v407_v36  ;;  %v451_v56 = vld [vmem:[#allocation5 + $0x180] sm:$0xff]  ;;  %v578_v36 = vld [vmem:[%s1017_s9 + $0xd0] sm:$0xff] }
  0x51   :  { %378 = vmatprep.subr.mxu0 %v301_v57  ;;  %507 = vmatprep.subr.mxu1 %v406_v37  ;;  %v450_v57 = vld [vmem:[#allocation5 + $0x178] sm:$0xff]  ;;  %v562_v37 = vld [vmem:[%s1017_s9 + $0x50] sm:$0xff] }
  0x52   :  { %379 = vmatpush2.msra.mxu0 %v300_v58  ;;  %508 = vmatpush1.msra.mxu1 %v405_v38  ;;  %v449_v58 = vld [vmem:[#allocation5 + $0x170] sm:$0xff]  ;;  %v577_v38 = vld [vmem:[%s1017_s9 + $0xc8] sm:$0xff] }
  0x53   :  { %380 = vmatprep.subr.mxu0 %v299_v59  ;;  %509 = vmatprep.subr.mxu1 %v404_v39  ;;  %v448_v59 = vld [vmem:[#allocation5 + $0x168] sm:$0xff] }
  0x54   :  { %381 = vmatpush2.msra.mxu0 %v298_v60  ;;  %510 = vmatpush1.msra.mxu1 %v403_v40  ;;  %v447_v60 = vld [vmem:[#allocation5 + $0x160] sm:$0xff]  ;;  %v561_v39 = vld [vmem:[%s1017_s9 + $0x48] sm:$0xff] }
  0x55   :  { %382 = vmatprep.subr.mxu0 %v297_v61  ;;  %511 = vmatprep.subr.mxu1 %v466_v41  ;;  %v446_v61 = vld [vmem:[#allocation5 + $0x158] sm:$0xff]  ;;  %v576_v40 = vld [vmem:[%s1017_s9 + $0xc0] sm:$0xff] }
  0x56   :  { %383 = vmatpush2.msra.mxu0 %v296_v62  ;;  %512 = vmatpush2.msra.mxu1 %v465_v42  ;;  %v445_v62 = vld [vmem:[#allocation5 + $0x150] sm:$0xff]  ;;  %v560_v41 = vld [vmem:[%s1017_s9 + $0x40] sm:$0xff]  ;;  %v575_v42 = vld [vmem:[%s1017_s9 + $0xb8] sm:$0xff] }
  0x57   :  { %384 = vmatprep.subr.mxu0 %v295_v63  ;;  %513 = vmatprep.subr.mxu1 %v464_v43  ;;  %v444_v63 = vld [vmem:[#allocation5 + $0x148] sm:$0xff]  ;;  %v559_v43 = vld [vmem:[%s1017_s9 + $0x38] sm:$0xff] }
  0x58   :  { %385 = vmatpush2.msra.mxu0 %v294_v0  ;;  %514 = vmatpush2.msra.mxu1 %v463_v44  ;;  %v443_v0 = vld [vmem:[#allocation5 + $0x140] sm:$0xff]  ;;  %v574_v44 = vld [vmem:[%s1017_s9 + $0xb0] sm:$0xff] }
  0x59   :  { %386 = vmatprep.subr.mxu0 %v293_v1  ;;  %515 = vmatprep.subr.mxu1 %v462_v45  ;;  %v240_v1 = vlaneseq  ;;  %v558_v45 = vld [vmem:[%s1017_s9 + $0x30] sm:$0xff] }
  0x5a   :  { %387 = vmatpush2.msra.mxu0 %v292_v2  ;;  %516 = vmatpush2.msra.mxu1 %v461_v46  ;;  %v573_v46 = vld [vmem:[%s1017_s9 + $0xa8] sm:$0xff] }
  0x5b   :  { %388 = vmatprep.subr.mxu0 %v291_v3  ;;  %517 = vmatprep.subr.mxu1 %v460_v47  ;;  %v241_v2 = vshrl.u32 %v240_v1, 7  ;;  %v557_v47 = vld [vmem:[%s1017_s9 + $0x28] sm:$0xff]  ;;  %v568_v1 = vld [vmem:[%s1017_s9 + $0x80] sm:$0xff] }
  0x5c   :  { %389 = vmatpush2.msra.mxu0 %v290_v4  ;;  %518 = vmatpush2.msra.mxu1 %v459_v48  ;;  %v572_v48 = vld [vmem:[%s1017_s9 + $0xa0] sm:$0xff] }
  0x5d   :  { %390 = vmatprep.subr.mxu0 %v289_v5  ;;  %519 = vmatprep.subr.mxu1 %v458_v49  ;;  %v887_v4 = vsub.s32 0, %v241_v2  ;;  %v238_v5 = vld [vmem:[%s1012_s4] sm:$0x3] }
  0x5e   :  { %391 = vmatpush2.msra.mxu0 %v288_v6  ;;  %520 = vmatpush2.msra.mxu1 %v457_v50  ;;  %v892_v6 = vsub.s32 1, %v241_v2  ;;  %v556_v49 = vld [vmem:[%s1017_s9 + $0x20] sm:$0xff] }
  0x5f   :  { %392 = vmatprep.subr.mxu0 %v287_v7  ;;  %521 = vmatprep.subr.mxu1 %v456_v51  ;;  %v243_v9 = vrot.slane %v238_v5, %v887_v4  ;;  %v318_v50 = vld [vmem:[%s1014_s6] sm:$0x3] }
  0x60   :  { %393 = vmatpush2.msra.mxu0 %v286_v8  ;;  %522 = vmatpush2.msra.mxu1 %v455_v52  ;;  %v247_v11 = vrot.slane %v238_v5, %v892_v6  ;;  %v323_v51 = vrot.slane %v318_v50, %v887_v4  ;;  %v327_v52 = vrot.slane %v318_v50, %v892_v6  ;;  %v552_v2 = vld [vmem:[%s1017_s9] sm:$0xff] }
  0x61   :  { %523 = vmatprep.subr.mxu1 %v454_v53  ;;  %686 = vmatprep.subr.mxu0 %v583_v26 }
  0x62   :  { %524 = vmatpush2.msra.mxu1 %v453_v54 }
  0x63   :  { %525 = vmatprep.subr.mxu1 %v452_v55 }
  0x64   :  { %526 = vmatpush2.msra.mxu1 %v451_v56 }
  0x65   :  { %527 = vmatprep.subr.mxu1 %v450_v57 }
  0x66   :  { %528 = vmatpush2.msra.mxu1 %v449_v58 }
  0x67   :  { %529 = vmatprep.subr.mxu1 %v448_v59  ;;  %v571_v59 = vld [vmem:[%s1017_s9 + $0x98] sm:$0xff] }
  0x68   :  { %530 = vmatpush2.msra.mxu1 %v447_v60  ;;  %v555_v60 = vld [vmem:[%s1017_s9 + $0x18] sm:$0xff] }
  0x69   :  { %531 = vmatprep.subr.mxu1 %v446_v61  ;;  %v570_v61 = vld [vmem:[%s1017_s9 + $0x90] sm:$0xff] }
  0x6a   :  { %532 = vmatpush2.msra.mxu1 %v445_v62  ;;  %v554_v62 = vld [vmem:[%s1017_s9 + $0x10] sm:$0xff] }
  0x6b   :  { %533 = vmatprep.subr.mxu1 %v444_v63  ;;  %v569_v63 = vld [vmem:[%s1017_s9 + $0x88] sm:$0xff] }
  0x6c   :  { %534 = vmatpush2.msra.mxu1 %v443_v0  ;;  %v553_v0 = vld [vmem:[%s1017_s9 + $0x8] sm:$0xff] }
  0x6d   :  { %535 = vmatprep.subr.mxu1 %v442_v18 }
  0x6e   :  { %536 = vmatpush2.msra.mxu1 %v441_v19 }
  0x6f   :  { %537 = vmatprep.subr.mxu1 %v440_v20 }
  0x70   :  { %538 = vmatpush2.msra.mxu1 %v439_v21 }
  0x71   :  { %539 = vmatprep.subr.mxu1 %v438_v22 }
  0x72   :  { %540 = vmatpush2.msra.mxu1 %v437_v23 }
  0x73   :  { %541 = vmatprep.subr.mxu1 %v436_v24 }
  0x74   :  { %542 = vmatpush2.msra.mxu1 %v435_v25 }
  0xe1   :  { %v151_v3 = vpop.f32.mrf.mxu1 }
  0xe3   :  { %v153_v7 = vpop.f32.mrf.mxu1 }
  0xe5   :  { %v233_v8 = vpop.f32.mrf.mxu1 }
  0xe6   :  { %v234_v10 = vadd.f32 %v233_v8, %v151_v3  ;;  %v467_v3 = vld [vmem:[%s1016_s8] sm:$0x3]  ;;  %s669_s8 = sshll.u32 %s799_s7, 4  ;;  %s670_s8 = int_to_ptr.vmem [resolvable:$true] %s669_s8 }
  0xe7   :  { %v235_v12 = vpop.f32.mrf.mxu1  ;;  %v472_v5 = vrot.slane %v467_v3, %v887_v4  ;;  %s768_s15 = scalar_lea.vmem %s670_s8, 128  ;;  %p773_p11 = scmp.lt.s32.totalorder %s670_s8, %s670_s8 }
  0xe8   :  { %v236_v13 = vadd.f32 %v235_v12, %v153_v7  ;;  %v250_v14 = vadd.f32 %v243_v9, %v234_v10  ;;  %v476_v7 = vrot.slane %v467_v3, %v892_v6  ;;  %p769_p10 = scmp.ne.s32.totalorder %s670_s8, %s768_s15  ;;  %p774_p12 = scmp.lt.s32.totalorder %s768_s15, %s768_s15 }
  0xea   :  { %v251_v15 = vadd.f32 %v247_v11, %v236_v13  ;;  %v252_v17 = vmax.f32 %v250_v14, 0.0  ;;  %p775_p13 = por %p774_p12, %p773_p11 }
  0xec   :  { %v253_v16 = vmax.f32 %v251_v15, 0.0  ;;  %v685_v15 = vld [vmem:[%s1018_s10] ss:$0 sm:$0xff]  ;;  %p776_p0 = pnand %p775_p13, %p769_p10 }
  0xee   :  { %394 = vmatprep.mubr.f32.mxu0 %v253_v16 }
  0xef   :  { %395 = vmatmul.mubr.f32.vlgmr.msra.gmra.mxu0 %v252_v17 }
  0xf0   :  { %687 = vmatpush3.msra.mxu0 %v567_v27 }
  0xf1   :  { %688 = vmatprep.subr.mxu0 %v582_v28 }
  0xf2   :  { %689 = vmatpush3.msra.mxu0 %v566_v29 }
  0xf3   :  { %690 = vmatprep.subr.mxu0 %v581_v30 }
  0xf4   :  { %691 = vmatpush3.msra.mxu0 %v565_v31 }
  0xf5   :  { %692 = vmatprep.subr.mxu0 %v580_v32 }
  0xf6   :  { %693 = vmatpush3.msra.mxu0 %v564_v33 }
  0xf7   :  { %694 = vmatprep.subr.mxu0 %v579_v34 }
  0xf8   :  { %695 = vmatpush3.msra.mxu0 %v563_v35 }
  0xf9   :  { %696 = vmatprep.subr.mxu0 %v578_v36 }
  0xfa   :  { %697 = vmatpush3.msra.mxu0 %v562_v37 }
  0xfb   :  { %698 = vmatprep.subr.mxu0 %v577_v38 }
  0xfc   :  { %699 = vmatpush3.msra.mxu0 %v561_v39 }
  0xfd   :  { %700 = vmatprep.subr.mxu0 %v576_v40 }
  0xfe   :  { %701 = vmatpush3.msra.mxu0 %v560_v41 }
  0xff   :  { %702 = vmatprep.subr.mxu0 %v575_v42 }
 0x100   :  { %703 = vmatpush3.msra.mxu0 %v559_v43 }
 0x101   :  { %704 = vmatprep.subr.mxu0 %v574_v44 }
 0x102   :  { %705 = vmatpush3.msra.mxu0 %v558_v45 }
 0x103   :  { %706 = vmatprep.subr.mxu0 %v573_v46 }
 0x104   :  { %707 = vmatpush3.msra.mxu0 %v557_v47 }
 0x105   :  { %708 = vmatprep.subr.mxu0 %v572_v48 }
 0x106   :  { %709 = vmatpush3.msra.mxu0 %v556_v49 }
 0x107   :  { %710 = vmatprep.subr.mxu0 %v571_v59 }
 0x108   :  { %711 = vmatpush3.msra.mxu0 %v555_v60 }
 0x109   :  { %712 = vmatprep.subr.mxu0 %v570_v61 }
 0x10a   :  { %713 = vmatpush3.msra.mxu0 %v554_v62 }
 0x10b   :  { %714 = vmatprep.subr.mxu0 %v569_v63 }
 0x10c   :  { %715 = vmatpush3.msra.mxu0 %v553_v0 }
 0x10d   :  { %716 = vmatprep.subr.mxu0 %v568_v1 }
 0x10e   :  { %717 = vmatpush3.msra.mxu0 %v552_v2 }
 0x1af   :  { %v396_v53 = vpop.f32.mrf.mxu0 }
 0x1b0   :  { %v397_v54 = vadd.f32 %v396_v53, %v323_v51 }
 0x1b1   :  { %v398_v55 = vpop.f32.mrf.mxu0 }
 0x1b2   :  { %v399_v56 = vadd.f32 %v398_v55, %v327_v52  ;;  %v401_v58 = vmax.f32 %v397_v54, 0.0 }
 0x1b4   :  { %v402_v57 = vmax.f32 %v399_v56, 0.0 }
 0x1b6   :  { %543 = vmatprep.mubr.f32.mxu1 %v402_v57 }
 0x1b7   :  { %544 = vmatmul.mubr.f32.vlgmr.msra.gmra.mxu1 %v401_v58 }
 0x277   :  { %v545_v8 = vpop.f32.mrf.mxu1 }
 0x278   :  { %v546_v9 = vadd.f32 %v545_v8, %v472_v5 }
 0x279   :  { %v547_v10 = vpop.f32.mrf.mxu1 }
 0x27a   :  { %v548_v11 = vadd.f32 %v547_v10, %v476_v7  ;;  %v550_v13 = vmax.f32 %v546_v9, 0.0 }
 0x27c   :  { %v551_v12 = vmax.f32 %v548_v11, 0.0 }
 0x27e   :  { %655 = vmatprep.mubr.f32.mxu0 %v551_v12 }
 0x27f   :  { %656 = vmatmul.mubr.f32.vlgmr.msra.gmra.mxu0 %v550_v13 }
 0x33f   :  { %v718_v14 = vpop.f32.mrf.mxu0 }
 0x341   :  { %v719_v16 = vpop.f32.mrf.mxu0 }
 0x342   :  { %v720_v17 = vadd.f32 %v719_v16, %v718_v14 }
 0x344   :  { %v658_v4 = vadd.f32 %v720_v17, %v685_v15 }
 0x346   :  { %662 = vst.msk [vmem:[#allocation7] sm:$0xff] %vm661_vm4, %v658_v4 }
 0x347   :  { %779 = shalt.err (!%p776_p0)
}
 0x348   :  { %672 = dma.vmem_to_hbm [thread:$0]  %s670_s8, 128, %s1019_s11, [#allocation4]  }
 0x349   :  { %792 = dma.done.wait [#allocation4], 128  }
 0x34a   :  { %793 = vsyncadd [#allocation4], 4294967168 }
 0x34b   :  { %676 = vsyncpa [#allocation3], 1 }
 0x34c   :  { %677 = vsyncpa [#allocation6], 1 }
 0x34d   :  { %678 = vsyncpa [#allocation4], 1 }

// kernel: tpu_custom_call.1
= control target key start
LH: loop header
LB: loop body
LE: loop exit
PB: predicated region body
PF: predicated region fallthrough
CT: control target
= control target key end

     0   :  { %16 = vsyncpa [#allocation3], 0  ;;  %s1008_s0 = inlined_call_operand.vmem [shape: f32[8,13], index: 0, kind: input, shape index: {}]   ;;  %s1009_s1 = inlined_call_operand.vmem [shape: f32[8,4], index: 1, kind: input, shape index: {}]   ;;  %s1010_s2 = inlined_call_operand.vmem [shape: f32[13,256], index: 2, kind: input, shape index: {}]   ;;  %s1011_s3 = inlined_call_operand.vmem [shape: f32[4,256], index: 3, kind: input, shape index: {}]   ;;  %s1012_s4 = inlined_call_operand.vmem [shape: f32[1,256], index: 4, kind: input, shape index: {}]   ;;  %s1013_s5 = inlined_call_operand.hbm [shape: f32[256,256], index: 5, kind: input, shape index: {}]   ;;  %s1014_s6 = inlined_call_operand.vmem [shape: f32[1,256], index: 6, kind: input, shape index: {}]   ;;  %s1015_s7 = inlined_call_operand.hbm [shape: f32[256,256], index: 7, kind: input, shape index: {}]   ;;  %s1016_s8 = inlined_call_operand.vmem [shape: f32[1,256], index: 8, kind: input, shape index: {}]   ;;  %s1017_s9 = inlined_call_operand.vmem [shape: f32[256,8], index: 9, kind: input, shape index: {}]   ;;  %s1018_s10 = inlined_call_operand.vmem [shape: f32[1,8], index: 10, kind: input, shape index: {}]   ;;  %s1019_s11 = inlined_call_operand.hbm [shape: f32[8,8], index: 11, kind: output, shape index: {}]  }
   0x1   :  { %17 = vsyncpa [#allocation6], 0 }
   0x2   :  { %18 = vsyncpa [#allocation4], 0  ;;  %s794_s17 = smov [#allocation2]  }
   0x3   :  { %s34_s18 = sshll.u32 %s794_s17, 4  ;;  %s35_s18 = int_to_ptr.vmem [resolvable:$true] %s34_s18 }
   0x4   :  { %s736_s19 = scalar_lea.vmem %s35_s18, 8192  ;;  %p741_p1 = scmp.lt.s32.totalorder %s35_s18, %s35_s18 }
   0x5   :  { %p737_p0 = scmp.ne.s32.totalorder %s35_s18, %s736_s19  ;;  %p742_p2 = scmp.lt.s32.totalorder %s736_s19, %s736_s19 }
   0x7   :  { %p743_p3 = por %p742_p2, %p741_p1 }
   0x9   :  { %p744_p4 = pnand %p743_p3, %p737_p0 }
   0xb   :  { %747 = shalt.err (!%p744_p4)
}
   0xc   :  { %s795_s20 = smov 256   ;;  %s796_s21 = smov 16  }
   0xd   :  { %40 = dma.hbm_to_vmem [thread:$0]  %s1013_s5, 8192, %s35_s18, [#allocation3], %s795_s20, %s795_s20, %s796_s21  }
   0xe   :  { %s797_s24 = smov [#allocation5]  }
   0xf   :  { %s48_s25 = sshll.u32 %s797_s24, 4  ;;  %s49_s25 = int_to_ptr.vmem [resolvable:$true] %s48_s25 }
  0x10   :  { %s756_s26 = scalar_lea.vmem %s49_s25, 8192  ;;  %p761_p6 = scmp.lt.s32.totalorder %s49_s25, %s49_s25 }
  0x11   :  { %p757_p5 = scmp.ne.s32.totalorder %s49_s25, %s756_s26  ;;  %p762_p7 = scmp.lt.s32.totalorder %s756_s26, %s756_s26 }
  0x13   :  { %p763_p8 = por %p762_p7, %p761_p6 }
  0x15   :  { %p764_p9 = pnand %p763_p8, %p757_p5 }
  0x17   :  { %767 = shalt.err (!%p764_p9)
}
  0x18   :  { %54 = dma.hbm_to_vmem [thread:$0]  %s1015_s7, 8192, %s49_s25, [#allocation6], %s795_s20, %s795_s20, %s796_s21  }
  0x19   :  { %788 = dma.done.wait [#allocation3], 8192  }
  0x1a   :  { %789 = vsyncadd [#allocation3], 4294959104 }
  0x1b   :  { %790 = dma.done.wait [#allocation6], 8192  }
  0x1c   :  { %791 = vsyncadd [#allocation6], 4294959104  ;;  %v798_v0 = vmov 0.0   ;;  %v73_v1 = vld [vmem:[%s1011_s3] sm:$0xff]  ;;  %vm80_vm0 = vcmask 1043456   ;;  %vm76_vm1 = vcmask 31744  }
  0x1d   :  { %149 = vmatprep.mubr.f32.mxu1 %v798_v0  ;;  %v75_v2 = vcombine.high %v73_v1, %v73_v1  ;;  %v72_v3 = vld [vmem:[%s1009_s1] sm:$0xff]  ;;  %v71_v4 = vld [vmem:[%s1010_s2 + $0x18] sm:$0x1f]  ;;  %vm160_vm2 = vcmask 1044480   ;;  %v284_v6 = vld [vmem:[#allocation2 + $0xf0] sm:$0xff]  ;;  %vm156_vm3 = vcmask 105472  }
  0x1e   :  { %v285_v5 = vld [vmem:[#allocation2 + $0xf8] sm:$0xff]  ;;  %v70_v7 = vld [vmem:[%s1010_s2 + $0x10] sm:$0x1f]  ;;  %v69_v8 = vld [vmem:[%s1010_s2 + $0x8] sm:$0xff]  ;;  %s799_s7 = smov [#allocation7]   ;;  %vm661_vm4 = vcmask 64512  }
  0x1f   :  { %679 = vmatprep.subr.msk.mxu1 %vm80_vm0, %v75_v2  ;;  %330 = vmatprep.subr.mxu0 %v285_v5  ;;  %v283_v9 = vld [vmem:[#allocation2 + $0xe8] sm:$0xff]  ;;  %v68_v10 = vld [vmem:[%s1010_s2] sm:$0xff]  ;;  %v281_v13 = vld [vmem:[#allocation2 + $0xd8] sm:$0xff] }
  0x20   :  { %680 = vmatpush1.msk.msra.mxu1 %vm80_vm0, %v73_v1  ;;  %331 = vmatpush1.msra.mxu0 %v284_v6  ;;  %v282_v11 = vld [vmem:[#allocation2 + $0xe0] sm:$0xff]  ;;  %v280_v14 = vld [vmem:[#allocation2 + $0xd0] sm:$0xff]  ;;  %v279_v15 = vld [vmem:[#allocation2 + $0xc8] sm:$0xff] }
  0x21   :  { %681 = vmatmul.mubr.msk.f32.vlgmr.msra.gmra.mxu1 %vm76_vm1, %v72_v3  ;;  %682 = vmatprep.subr.msk.mxu1 %vm160_vm2, %v71_v4  ;;  %v67_v12 = vld [vmem:[%s1008_s0] sm:$0xff]  ;;  %v277_v17 = vld [vmem:[#allocation2 + $0xb8] sm:$0xff]  ;;  %v276_v18 = vld [vmem:[#allocation2 + $0xb0] sm:$0xff] }
  0x22   :  { %683 = vmatpush1.msk.msra.mxu1 %vm160_vm2, %v70_v7  ;;  %231 = vmatprep.mubr.f32.mxu1 %v798_v0  ;;  %v278_v16 = vld [vmem:[#allocation2 + $0xc0] sm:$0xff]  ;;  %v275_v19 = vld [vmem:[#allocation2 + $0xa8] sm:$0xff]  ;;  %v273_v21 = vld [vmem:[#allocation2 + $0x98] sm:$0xff] }
  0x23   :  { %197 = vmatprep.subr.mxu1 %v69_v8  ;;  %332 = vmatprep.subr.mxu0 %v283_v9  ;;  %v274_v20 = vld [vmem:[#allocation2 + $0xa0] sm:$0xff]  ;;  %v272_v22 = vld [vmem:[#allocation2 + $0x90] sm:$0xff]  ;;  %v271_v23 = vld [vmem:[#allocation2 + $0x88] sm:$0xff] }
  0x24   :  { %198 = vmatpush1.msra.mxu1 %v68_v10  ;;  %333 = vmatpush1.msra.mxu0 %v282_v11  ;;  %v270_v24 = vld [vmem:[#allocation2 + $0x80] sm:$0xff]  ;;  %v269_v25 = vld [vmem:[#allocation2 + $0x78] sm:$0xff]  ;;  %v268_v26 = vld [vmem:[#allocation2 + $0x70] sm:$0xff] }
  0x25   :  { %684 = vmatmul.mubr.msk.f32.vlgmr.msra.gmra.mxu1 %vm156_vm3, %v67_v12  ;;  %334 = vmatprep.subr.mxu0 %v281_v13  ;;  %v267_v27 = vld [vmem:[#allocation2 + $0x68] sm:$0xff]  ;;  %v266_v28 = vld [vmem:[#allocation2 + $0x60] sm:$0xff]  ;;  %v265_v29 = vld [vmem:[#allocation2 + $0x58] sm:$0xff] }
  0x26   :  { %335 = vmatpush1.msra.mxu0 %v280_v14  ;;  %v264_v30 = vld [vmem:[#allocation2 + $0x50] sm:$0xff]  ;;  %v263_v31 = vld [vmem:[#allocation2 + $0x48] sm:$0xff]  ;;  %v262_v32 = vld [vmem:[#allocation2 + $0x40] sm:$0xff] }
  0x27   :  { %336 = vmatprep.subr.mxu0 %v279_v15  ;;  %v261_v33 = vld [vmem:[#allocation2 + $0x38] sm:$0xff]  ;;  %v260_v34 = vld [vmem:[#allocation2 + $0x30] sm:$0xff]  ;;  %v259_v35 = vld [vmem:[#allocation2 + $0x28] sm:$0xff] }
  0x28   :  { %337 = vmatpush1.msra.mxu0 %v278_v16  ;;  %v258_v36 = vld [vmem:[#allocation2 + $0x20] sm:$0xff]  ;;  %v257_v37 = vld [vmem:[#allocation2 + $0x18] sm:$0xff]  ;;  %v256_v38 = vld [vmem:[#allocation2 + $0x10] sm:$0xff] }
  0x29   :  { %338 = vmatprep.subr.mxu0 %v277_v17  ;;  %v255_v39 = vld [vmem:[#allocation2 + $0x8] sm:$0xff]  ;;  %v254_v40 = vld [vmem:[#allocation2] sm:$0xff]  ;;  %v317_v41 = vld [vmem:[#allocation2 + $0x1f8] sm:$0xff] }
  0x2a   :  { %339 = vmatpush1.msra.mxu0 %v276_v18  ;;  %v316_v42 = vld [vmem:[#allocation2 + $0x1f0] sm:$0xff]  ;;  %v315_v43 = vld [vmem:[#allocation2 + $0x1e8] sm:$0xff]  ;;  %v314_v44 = vld [vmem:[#allocation2 + $0x1e0] sm:$0xff] }
  0x2b   :  { %340 = vmatprep.subr.mxu0 %v275_v19  ;;  %v313_v45 = vld [vmem:[#allocation2 + $0x1d8] sm:$0xff]  ;;  %v312_v46 = vld [vmem:[#allocation2 + $0x1d0] sm:$0xff]  ;;  %v311_v47 = vld [vmem:[#allocation2 + $0x1c8] sm:$0xff] }
  0x2c   :  { %341 = vmatpush1.msra.mxu0 %v274_v20  ;;  %v310_v48 = vld [vmem:[#allocation2 + $0x1c0] sm:$0xff]  ;;  %v309_v49 = vld [vmem:[#allocation2 + $0x1b8] sm:$0xff]  ;;  %v308_v50 = vld [vmem:[#allocation2 + $0x1b0] sm:$0xff] }
  0x2d   :  { %342 = vmatprep.subr.mxu0 %v273_v21  ;;  %v307_v51 = vld [vmem:[#allocation2 + $0x1a8] sm:$0xff]  ;;  %v306_v52 = vld [vmem:[#allocation2 + $0x1a0] sm:$0xff]  ;;  %v305_v53 = vld [vmem:[#allocation2 + $0x198] sm:$0xff] }
  0x2e   :  { %343 = vmatpush1.msra.mxu0 %v272_v22  ;;  %v304_v54 = vld [vmem:[#allocation2 + $0x190] sm:$0xff]  ;;  %v303_v55 = vld [vmem:[#allocation2 + $0x188] sm:$0xff]  ;;  %v302_v56 = vld [vmem:[#allocation2 + $0x180] sm:$0xff] }
  0x2f   :  { %344 = vmatprep.subr.mxu0 %v271_v23  ;;  %v301_v57 = vld [vmem:[#allocation2 + $0x178] sm:$0xff]  ;;  %v300_v58 = vld [vmem:[#allocation2 + $0x170] sm:$0xff]  ;;  %v299_v59 = vld [vmem:[#allocation2 + $0x168] sm:$0xff] }
  0x30   :  { %345 = vmatpush1.msra.mxu0 %v270_v24  ;;  %v298_v60 = vld [vmem:[#allocation2 + $0x160] sm:$0xff]  ;;  %v297_v61 = vld [vmem:[#allocation2 + $0x158] sm:$0xff]  ;;  %v296_v62 = vld [vmem:[#allocation2 + $0x150] sm:$0xff] }
  0x31   :  { %346 = vmatprep.subr.mxu0 %v269_v25  ;;  %v295_v63 = vld [vmem:[#allocation2 + $0x148] sm:$0xff]  ;;  %v294_v0 = vld [vmem:[#allocation2 + $0x140] sm:$0xff]  ;;  %v293_v1 = vld [vmem:[#allocation2 + $0x138] sm:$0xff] }
  0x32   :  { %347 = vmatpush1.msra.mxu0 %v268_v26  ;;  %v292_v2 = vld [vmem:[#allocation2 + $0x130] sm:$0xff]  ;;  %v291_v3 = vld [vmem:[#allocation2 + $0x128] sm:$0xff]  ;;  %v290_v4 = vld [vmem:[#allocation2 + $0x120] sm:$0xff] }
  0x33   :  { %348 = vmatprep.subr.mxu0 %v267_v27  ;;  %v289_v5 = vld [vmem:[#allocation2 + $0x118] sm:$0xff]  ;;  %v288_v6 = vld [vmem:[#allocation2 + $0x110] sm:$0xff]  ;;  %v287_v7 = vld [vmem:[#allocation2 + $0x108] sm:$0xff] }
  0x34   :  { %349 = vmatpush1.msra.mxu0 %v266_v28  ;;  %v286_v8 = vld [vmem:[#allocation2 + $0x100] sm:$0xff]  ;;  %v434_v9 = vld [vmem:[#allocation5 + $0xf8] sm:$0xff]  ;;  %v433_v10 = vld [vmem:[#allocation5 + $0xf0] sm:$0xff] }
  0x35   :  { %350 = vmatprep.subr.mxu0 %v265_v29  ;;  %v432_v11 = vld [vmem:[#allocation5 + $0xe8] sm:$0xff]  ;;  %479 = vmatprep.subr.mxu1 %v434_v9  ;;  %v431_v12 = vld [vmem:[#allocation5 + $0xe0] sm:$0xff]  ;;  %v430_v13 = vld [vmem:[#allocation5 + $0xd8] sm:$0xff] }
  0x36   :  { %351 = vmatpush1.msra.mxu0 %v264_v30  ;;  %480 = vmatpush1.msra.mxu1 %v433_v10  ;;  %v429_v14 = vld [vmem:[#allocation5 + $0xd0] sm:$0xff]  ;;  %v428_v15 = vld [vmem:[#allocation5 + $0xc8] sm:$0xff]  ;;  %v427_v16 = vld [vmem:[#allocation5 + $0xc0] sm:$0xff] }
  0x37   :  { %352 = vmatprep.subr.mxu0 %v263_v31  ;;  %481 = vmatprep.subr.mxu1 %v432_v11  ;;  %v426_v17 = vld [vmem:[#allocation5 + $0xb8] sm:$0xff]  ;;  %v425_v18 = vld [vmem:[#allocation5 + $0xb0] sm:$0xff]  ;;  %v424_v19 = vld [vmem:[#allocation5 + $0xa8] sm:$0xff] }
  0x38   :  { %353 = vmatpush1.msra.mxu0 %v262_v32  ;;  %482 = vmatpush1.msra.mxu1 %v431_v12  ;;  %v423_v20 = vld [vmem:[#allocation5 + $0xa0] sm:$0xff]  ;;  %v422_v21 = vld [vmem:[#allocation5 + $0x98] sm:$0xff]  ;;  %v421_v22 = vld [vmem:[#allocation5 + $0x90] sm:$0xff] }
  0x39   :  { %354 = vmatprep.subr.mxu0 %v261_v33  ;;  %483 = vmatprep.subr.mxu1 %v430_v13  ;;  %v420_v23 = vld [vmem:[#allocation5 + $0x88] sm:$0xff]  ;;  %v419_v24 = vld [vmem:[#allocation5 + $0x80] sm:$0xff]  ;;  %v418_v25 = vld [vmem:[#allocation5 + $0x78] sm:$0xff] }
  0x3a   :  { %355 = vmatpush1.msra.mxu0 %v260_v34  ;;  %484 = vmatpush1.msra.mxu1 %v429_v14  ;;  %v417_v26 = vld [vmem:[#allocation5 + $0x70] sm:$0xff]  ;;  %v416_v27 = vld [vmem:[#allocation5 + $0x68] sm:$0xff]  ;;  %v415_v28 = vld [vmem:[#allocation5 + $0x60] sm:$0xff] }
  0x3b   :  { %356 = vmatprep.subr.mxu0 %v259_v35  ;;  %485 = vmatprep.subr.mxu1 %v428_v15  ;;  %v414_v29 = vld [vmem:[#allocation5 + $0x58] sm:$0xff]  ;;  %v413_v30 = vld [vmem:[#allocation5 + $0x50] sm:$0xff]  ;;  %v412_v31 = vld [vmem:[#allocation5 + $0x48] sm:$0xff] }
  0x3c   :  { %357 = vmatpush1.msra.mxu0 %v258_v36  ;;  %486 = vmatpush1.msra.mxu1 %v427_v16  ;;  %v411_v32 = vld [vmem:[#allocation5 + $0x40] sm:$0xff]  ;;  %v410_v33 = vld [vmem:[#allocation5 + $0x38] sm:$0xff]  ;;  %v409_v34 = vld [vmem:[#allocation5 + $0x30] sm:$0xff] }
  0x3d   :  { %358 = vmatprep.subr.mxu0 %v257_v37  ;;  %487 = vmatprep.subr.mxu1 %v426_v17  ;;  %v408_v35 = vld [vmem:[#allocation5 + $0x28] sm:$0xff]  ;;  %v407_v36 = vld [vmem:[#allocation5 + $0x20] sm:$0xff]  ;;  %v406_v37 = vld [vmem:[#allocation5 + $0x18] sm:$0xff] }
  0x3e   :  { %359 = vmatpush1.msra.mxu0 %v256_v38  ;;  %488 = vmatpush1.msra.mxu1 %v425_v18  ;;  %v405_v38 = vld [vmem:[#allocation5 + $0x10] sm:$0xff]  ;;  %v442_v18 = vld [vmem:[#allocation5 + $0x138] sm:$0xff] }
  0x3f   :  { %360 = vmatprep.subr.mxu0 %v255_v39  ;;  %489 = vmatprep.subr.mxu1 %v424_v19  ;;  %v404_v39 = vld [vmem:[#allocation5 + $0x8] sm:$0xff]  ;;  %v441_v19 = vld [vmem:[#allocation5 + $0x130] sm:$0xff] }
  0x40   :  { %361 = vmatpush1.msra.mxu0 %v254_v40  ;;  %490 = vmatpush1.msra.mxu1 %v423_v20  ;;  %v403_v40 = vld [vmem:[#allocation5] sm:$0xff]  ;;  %v440_v20 = vld [vmem:[#allocation5 + $0x128] sm:$0xff] }
  0x41   :  { %362 = vmatprep.subr.mxu0 %v317_v41  ;;  %491 = vmatprep.subr.mxu1 %v422_v21  ;;  %v466_v41 = vld [vmem:[#allocation5 + $0x1f8] sm:$0xff]  ;;  %v439_v21 = vld [vmem:[#allocation5 + $0x120] sm:$0xff] }
  0x42   :  { %363 = vmatpush2.msra.mxu0 %v316_v42  ;;  %492 = vmatpush1.msra.mxu1 %v421_v22  ;;  %v465_v42 = vld [vmem:[#allocation5 + $0x1f0] sm:$0xff]  ;;  %v438_v22 = vld [vmem:[#allocation5 + $0x118] sm:$0xff] }
  0x43   :  { %364 = vmatprep.subr.mxu0 %v315_v43  ;;  %493 = vmatprep.subr.mxu1 %v420_v23  ;;  %v464_v43 = vld [vmem:[#allocation5 + $0x1e8] sm:$0xff]  ;;  %v437_v23 = vld [vmem:[#allocation5 + $0x110] sm:$0xff] }
  0x44   :  { %365 = vmatpush2.msra.mxu0 %v314_v44  ;;  %494 = vmatpush1.msra.mxu1 %v419_v24  ;;  %v463_v44 = vld [vmem:[#allocation5 + $0x1e0] sm:$0xff]  ;;  %v436_v24 = vld [vmem:[#allocation5 + $0x108] sm:$0xff] }
  0x45   :  { %366 = vmatprep.subr.mxu0 %v313_v45  ;;  %495 = vmatprep.subr.mxu1 %v418_v25  ;;  %v462_v45 = vld [vmem:[#allocation5 + $0x1d8] sm:$0xff]  ;;  %v435_v25 = vld [vmem:[#allocation5 + $0x100] sm:$0xff] }
  0x46   :  { %367 = vmatpush2.msra.mxu0 %v312_v46  ;;  %496 = vmatpush1.msra.mxu1 %v417_v26  ;;  %v461_v46 = vld [vmem:[#allocation5 + $0x1d0] sm:$0xff]  ;;  %v583_v26 = vld [vmem:[%s1017_s9 + $0xf8] sm:$0xff] }
  0x47   :  { %368 = vmatprep.subr.mxu0 %v311_v47  ;;  %497 = vmatprep.subr.mxu1 %v416_v27  ;;  %v460_v47 = vld [vmem:[#allocation5 + $0x1c8] sm:$0xff]  ;;  %v567_v27 = vld [vmem:[%s1017_s9 + $0x78] sm:$0xff] }
  0x48   :  { %369 = vmatpush2.msra.mxu0 %v310_v48  ;;  %498 = vmatpush1.msra.mxu1 %v415_v28  ;;  %v459_v48 = vld [vmem:[#allocation5 + $0x1c0] sm:$0xff]  ;;  %v582_v28 = vld [vmem:[%s1017_s9 + $0xf0] sm:$0xff] }
  0x49   :  { %370 = vmatprep.subr.mxu0 %v309_v49  ;;  %499 = vmatprep.subr.mxu1 %v414_v29  ;;  %v458_v49 = vld [vmem:[#allocation5 + $0x1b8] sm:$0xff]  ;;  %v566_v29 = vld [vmem:[%s1017_s9 + $0x70] sm:$0xff] }
  0x4a   :  { %371 = vmatpush2.msra.mxu0 %v308_v50  ;;  %500 = vmatpush1.msra.mxu1 %v413_v30  ;;  %v457_v50 = vld [vmem:[#allocation5 + $0x1b0] sm:$0xff]  ;;  %v581_v30 = vld [vmem:[%s1017_s9 + $0xe8] sm:$0xff] }
  0x4b   :  { %372 = vmatprep.subr.mxu0 %v307_v51  ;;  %501 = vmatprep.subr.mxu1 %v412_v31  ;;  %v456_v51 = vld [vmem:[#allocation5 + $0x1a8] sm:$0xff] }
  0x4c   :  { %373 = vmatpush2.msra.mxu0 %v306_v52  ;;  %502 = vmatpush1.msra.mxu1 %v411_v32  ;;  %v455_v52 = vld [vmem:[#allocation5 + $0x1a0] sm:$0xff]  ;;  %v565_v31 = vld [vmem:[%s1017_s9 + $0x68] sm:$0xff] }
  0x4d   :  { %374 = vmatprep.subr.mxu0 %v305_v53  ;;  %503 = vmatprep.subr.mxu1 %v410_v33  ;;  %v454_v53 = vld [vmem:[#allocation5 + $0x198] sm:$0xff]  ;;  %v580_v32 = vld [vmem:[%s1017_s9 + $0xe0] sm:$0xff] }
  0x4e   :  { %375 = vmatpush2.msra.mxu0 %v304_v54  ;;  %504 = vmatpush1.msra.mxu1 %v409_v34  ;;  %v453_v54 = vld [vmem:[#allocation5 + $0x190] sm:$0xff]  ;;  %v564_v33 = vld [vmem:[%s1017_s9 + $0x60] sm:$0xff]  ;;  %v579_v34 = vld [vmem:[%s1017_s9 + $0xd8] sm:$0xff] }
  0x4f   :  { %376 = vmatprep.subr.mxu0 %v303_v55  ;;  %505 = vmatprep.subr.mxu1 %v408_v35  ;;  %v452_v55 = vld [vmem:[#allocation5 + $0x188] sm:$0xff]  ;;  %v563_v35 = vld [vmem:[%s1017_s9 + $0x58] sm:$0xff] }
  0x50   :  { %377 = vmatpush2.msra.mxu0 %v302_v56  ;;  %506 = vmatpush1.msra.mxu1 %v407_v36  ;;  %v451_v56 = vld [vmem:[#allocation5 + $0x180] sm:$0xff]  ;;  %v578_v36 = vld [vmem:[%s1017_s9 + $0xd0] sm:$0xff] }
  0x51   :  { %378 = vmatprep.subr.mxu0 %v301_v57  ;;  %507 = vmatprep.subr.mxu1 %v406_v37  ;;  %v450_v57 = vld [vmem:[#allocation5 + $0x178] sm:$0xff]  ;;  %v562_v37 = vld [vmem:[%s1017_s9 + $0x50] sm:$0xff] }
  0x52   :  { %379 = vmatpush2.msra.mxu0 %v300_v58  ;;  %508 = vmatpush1.msra.mxu1 %v405_v38  ;;  %v449_v58 = vld [vmem:[#allocation5 + $0x170] sm:$0xff]  ;;  %v577_v38 = vld [vmem:[%s1017_s9 + $0xc8] sm:$0xff] }
  0x53   :  { %380 = vmatprep.subr.mxu0 %v299_v59  ;;  %509 = vmatprep.subr.mxu1 %v404_v39  ;;  %v448_v59 = vld [vmem:[#allocation5 + $0x168] sm:$0xff] }
  0x54   :  { %381 = vmatpush2.msra.mxu0 %v298_v60  ;;  %510 = vmatpush1.msra.mxu1 %v403_v40  ;;  %v447_v60 = vld [vmem:[#allocation5 + $0x160] sm:$0xff]  ;;  %v561_v39 = vld [vmem:[%s1017_s9 + $0x48] sm:$0xff] }
  0x55   :  { %382 = vmatprep.subr.mxu0 %v297_v61  ;;  %511 = vmatprep.subr.mxu1 %v466_v41  ;;  %v446_v61 = vld [vmem:[#allocation5 + $0x158] sm:$0xff]  ;;  %v576_v40 = vld [vmem:[%s1017_s9 + $0xc0] sm:$0xff] }
  0x56   :  { %383 = vmatpush2.msra.mxu0 %v296_v62  ;;  %512 = vmatpush2.msra.mxu1 %v465_v42  ;;  %v445_v62 = vld [vmem:[#allocation5 + $0x150] sm:$0xff]  ;;  %v560_v41 = vld [vmem:[%s1017_s9 + $0x40] sm:$0xff]  ;;  %v575_v42 = vld [vmem:[%s1017_s9 + $0xb8] sm:$0xff] }
  0x57   :  { %384 = vmatprep.subr.mxu0 %v295_v63  ;;  %513 = vmatprep.subr.mxu1 %v464_v43  ;;  %v444_v63 = vld [vmem:[#allocation5 + $0x148] sm:$0xff]  ;;  %v559_v43 = vld [vmem:[%s1017_s9 + $0x38] sm:$0xff] }
  0x58   :  { %385 = vmatpush2.msra.mxu0 %v294_v0  ;;  %514 = vmatpush2.msra.mxu1 %v463_v44  ;;  %v443_v0 = vld [vmem:[#allocation5 + $0x140] sm:$0xff]  ;;  %v574_v44 = vld [vmem:[%s1017_s9 + $0xb0] sm:$0xff] }
  0x59   :  { %386 = vmatprep.subr.mxu0 %v293_v1  ;;  %515 = vmatprep.subr.mxu1 %v462_v45  ;;  %v240_v1 = vlaneseq  ;;  %v558_v45 = vld [vmem:[%s1017_s9 + $0x30] sm:$0xff] }
  0x5a   :  { %387 = vmatpush2.msra.mxu0 %v292_v2  ;;  %516 = vmatpush2.msra.mxu1 %v461_v46  ;;  %v573_v46 = vld [vmem:[%s1017_s9 + $0xa8] sm:$0xff] }
  0x5b   :  { %388 = vmatprep.subr.mxu0 %v291_v3  ;;  %517 = vmatprep.subr.mxu1 %v460_v47  ;;  %v241_v2 = vshrl.u32 %v240_v1, 7  ;;  %v557_v47 = vld [vmem:[%s1017_s9 + $0x28] sm:$0xff]  ;;  %v568_v1 = vld [vmem:[%s1017_s9 + $0x80] sm:$0xff] }
  0x5c   :  { %389 = vmatpush2.msra.mxu0 %v290_v4  ;;  %518 = vmatpush2.msra.mxu1 %v459_v48  ;;  %v572_v48 = vld [vmem:[%s1017_s9 + $0xa0] sm:$0xff] }
  0x5d   :  { %390 = vmatprep.subr.mxu0 %v289_v5  ;;  %519 = vmatprep.subr.mxu1 %v458_v49  ;;  %v887_v4 = vsub.s32 0, %v241_v2  ;;  %v238_v5 = vld [vmem:[%s1012_s4] sm:$0x3] }
  0x5e   :  { %391 = vmatpush2.msra.mxu0 %v288_v6  ;;  %520 = vmatpush2.msra.mxu1 %v457_v50  ;;  %v892_v6 = vsub.s32 1, %v241_v2  ;;  %v556_v49 = vld [vmem:[%s1017_s9 + $0x20] sm:$0xff] }
  0x5f   :  { %392 = vmatprep.subr.mxu0 %v287_v7  ;;  %521 = vmatprep.subr.mxu1 %v456_v51  ;;  %v243_v9 = vrot.slane %v238_v5, %v887_v4  ;;  %v318_v50 = vld [vmem:[%s1014_s6] sm:$0x3] }
  0x60   :  { %393 = vmatpush2.msra.mxu0 %v286_v8  ;;  %522 = vmatpush2.msra.mxu1 %v455_v52  ;;  %v247_v11 = vrot.slane %v238_v5, %v892_v6  ;;  %v323_v51 = vrot.slane %v318_v50, %v887_v4  ;;  %v327_v52 = vrot.slane %v318_v50, %v892_v6  ;;  %v552_v2 = vld [vmem:[%s1017_s9] sm:$0xff] }
  0x61   :  { %523 = vmatprep.subr.mxu1 %v454_v53  ;;  %686 = vmatprep.subr.mxu0 %v583_v26 }
  0x62   :  { %524 = vmatpush2.msra.mxu1 %v453_v54 }
  0x63   :  { %525 = vmatprep.subr.mxu1 %v452_v55 }
  0x64   :  { %526 = vmatpush2.msra.mxu1 %v451_v56 }
  0x65   :  { %527 = vmatprep.subr.mxu1 %v450_v57 }
  0x66   :  { %528 = vmatpush2.msra.mxu1 %v449_v58 }
  0x67   :  { %529 = vmatprep.subr.mxu1 %v448_v59  ;;  %v571_v59 = vld [vmem:[%s1017_s9 + $0x98] sm:$0xff] }
  0x68   :  { %530 = vmatpush2.msra.mxu1 %v447_v60  ;;  %v555_v60 = vld [vmem:[%s1017_s9 + $0x18] sm:$0xff] }
  0x69   :  { %531 = vmatprep.subr.mxu1 %v446_v61  ;;  %v570_v61 = vld [vmem:[%s1017_s9 + $0x90] sm:$0xff] }
  0x6a   :  { %532 = vmatpush2.msra.mxu1 %v445_v62  ;;  %v554_v62 = vld [vmem:[%s1017_s9 + $0x10] sm:$0xff] }
  0x6b   :  { %533 = vmatprep.subr.mxu1 %v444_v63  ;;  %v569_v63 = vld [vmem:[%s1017_s9 + $0x88] sm:$0xff] }
  0x6c   :  { %534 = vmatpush2.msra.mxu1 %v443_v0  ;;  %v553_v0 = vld [vmem:[%s1017_s9 + $0x8] sm:$0xff] }
  0x6d   :  { %535 = vmatprep.subr.mxu1 %v442_v18 }
  0x6e   :  { %536 = vmatpush2.msra.mxu1 %v441_v19 }
  0x6f   :  { %537 = vmatprep.subr.mxu1 %v440_v20 }
  0x70   :  { %538 = vmatpush2.msra.mxu1 %v439_v21 }
  0x71   :  { %539 = vmatprep.subr.mxu1 %v438_v22 }
  0x72   :  { %540 = vmatpush2.msra.mxu1 %v437_v23 }
  0x73   :  { %541 = vmatprep.subr.mxu1 %v436_v24 }
  0x74   :  { %542 = vmatpush2.msra.mxu1 %v435_v25 }
  0xe1   :  { %v151_v3 = vpop.f32.mrf.mxu1 }
  0xe3   :  { %v153_v7 = vpop.f32.mrf.mxu1 }
  0xe5   :  { %v233_v8 = vpop.f32.mrf.mxu1 }
  0xe6   :  { %v234_v10 = vadd.f32 %v233_v8, %v151_v3  ;;  %v467_v3 = vld [vmem:[%s1016_s8] sm:$0x3]  ;;  %s669_s8 = sshll.u32 %s799_s7, 4  ;;  %s670_s8 = int_to_ptr.vmem [resolvable:$true] %s669_s8 }
  0xe7   :  { %v235_v12 = vpop.f32.mrf.mxu1  ;;  %v472_v5 = vrot.slane %v467_v3, %v887_v4  ;;  %s768_s15 = scalar_lea.vmem %s670_s8, 128  ;;  %p773_p11 = scmp.lt.s32.totalorder %s670_s8, %s670_s8 }
  0xe8   :  { %v236_v13 = vadd.f32 %v235_v12, %v153_v7  ;;  %v250_v14 = vadd.f32 %v243_v9, %v234_v10  ;;  %v476_v7 = vrot.slane %v467_v3, %v892_v6  ;;  %p769_p10 = scmp.ne.s32.totalorder %s670_s8, %s768_s15  ;;  %p774_p12 = scmp.lt.s32.totalorder %s768_s15, %s768_s15 }
  0xea   :  { %v251_v15 = vadd.f32 %v247_v11, %v236_v13  ;;  %v252_v17 = vmax.f32 %v250_v14, 0.0  ;;  %p775_p13 = por %p774_p12, %p773_p11 }
  0xec   :  { %v253_v16 = vmax.f32 %v251_v15, 0.0  ;;  %v685_v15 = vld [vmem:[%s1018_s10] ss:$0 sm:$0xff]  ;;  %p776_p0 = pnand %p775_p13, %p769_p10 }
  0xee   :  { %394 = vmatprep.mubr.f32.mxu0 %v253_v16 }
  0xef   :  { %395 = vmatmul.mubr.f32.vlgmr.msra.gmra.mxu0 %v252_v17 }
  0xf0   :  { %687 = vmatpush3.msra.mxu0 %v567_v27 }
  0xf1   :  { %688 = vmatprep.subr.mxu0 %v582_v28 }
  0xf2   :  { %689 = vmatpush3.msra.mxu0 %v566_v29 }
  0xf3   :  { %690 = vmatprep.subr.mxu0 %v581_v30 }
  0xf4   :  { %691 = vmatpush3.msra.mxu0 %v565_v31 }
  0xf5   :  { %692 = vmatprep.subr.mxu0 %v580_v32 }
  0xf6   :  { %693 = vmatpush3.msra.mxu0 %v564_v33 }
  0xf7   :  { %694 = vmatprep.subr.mxu0 %v579_v34 }
  0xf8   :  { %695 = vmatpush3.msra.mxu0 %v563_v35 }
  0xf9   :  { %696 = vmatprep.subr.mxu0 %v578_v36 }
  0xfa   :  { %697 = vmatpush3.msra.mxu0 %v562_v37 }
  0xfb   :  { %698 = vmatprep.subr.mxu0 %v577_v38 }
  0xfc   :  { %699 = vmatpush3.msra.mxu0 %v561_v39 }
  0xfd   :  { %700 = vmatprep.subr.mxu0 %v576_v40 }
  0xfe   :  { %701 = vmatpush3.msra.mxu0 %v560_v41 }
  0xff   :  { %702 = vmatprep.subr.mxu0 %v575_v42 }
 0x100   :  { %703 = vmatpush3.msra.mxu0 %v559_v43 }
 0x101   :  { %704 = vmatprep.subr.mxu0 %v574_v44 }
 0x102   :  { %705 = vmatpush3.msra.mxu0 %v558_v45 }
 0x103   :  { %706 = vmatprep.subr.mxu0 %v573_v46 }
 0x104   :  { %707 = vmatpush3.msra.mxu0 %v557_v47 }
 0x105   :  { %708 = vmatprep.subr.mxu0 %v572_v48 }
 0x106   :  { %709 = vmatpush3.msra.mxu0 %v556_v49 }
 0x107   :  { %710 = vmatprep.subr.mxu0 %v571_v59 }
 0x108   :  { %711 = vmatpush3.msra.mxu0 %v555_v60 }
 0x109   :  { %712 = vmatprep.subr.mxu0 %v570_v61 }
 0x10a   :  { %713 = vmatpush3.msra.mxu0 %v554_v62 }
 0x10b   :  { %714 = vmatprep.subr.mxu0 %v569_v63 }
 0x10c   :  { %715 = vmatpush3.msra.mxu0 %v553_v0 }
 0x10d   :  { %716 = vmatprep.subr.mxu0 %v568_v1 }
 0x10e   :  { %717 = vmatpush3.msra.mxu0 %v552_v2 }
 0x1af   :  { %v396_v53 = vpop.f32.mrf.mxu0 }
 0x1b0   :  { %v397_v54 = vadd.f32 %v396_v53, %v323_v51 }
 0x1b1   :  { %v398_v55 = vpop.f32.mrf.mxu0 }
 0x1b2   :  { %v399_v56 = vadd.f32 %v398_v55, %v327_v52  ;;  %v401_v58 = vmax.f32 %v397_v54, 0.0 }
 0x1b4   :  { %v402_v57 = vmax.f32 %v399_v56, 0.0 }
 0x1b6   :  { %543 = vmatprep.mubr.f32.mxu1 %v402_v57 }
 0x1b7   :  { %544 = vmatmul.mubr.f32.vlgmr.msra.gmra.mxu1 %v401_v58 }
 0x277   :  { %v545_v8 = vpop.f32.mrf.mxu1 }
 0x278   :  { %v546_v9 = vadd.f32 %v545_v8, %v472_v5 }
 0x279   :  { %v547_v10 = vpop.f32.mrf.mxu1 }
 0x27a   :  { %v548_v11 = vadd.f32 %v547_v10, %v476_v7  ;;  %v550_v13 = vmax.f32 %v546_v9, 0.0 }
 0x27c   :  { %v551_v12 = vmax.f32 %v548_v11, 0.0 }
 0x27e   :  { %655 = vmatprep.mubr.f32.mxu0 %v551_v12 }
 0x27f   :  { %656 = vmatmul.mubr.f32.vlgmr.msra.gmra.mxu0 %v550_v13 }
 0x33f   :  { %v718_v14 = vpop.f32.mrf.mxu0 }
 0x341   :  { %v719_v16 = vpop.f32.mrf.mxu0 }
 0x342   :  { %v720_v17 = vadd.f32 %v719_v16, %v718_v14 }
 0x344   :  { %v658_v4 = vadd.f32 %v720_v17, %v685_v15 }
 0x346   :  { %662 = vst.msk [vmem:[#allocation7] sm:$0xff] %vm661_vm4, %v658_v4 }
 0x347   :  { %779 = shalt.err (!%p776_p0)
}
 0x348   :  { %672 = dma.vmem_to_hbm [thread:$0]  %s670_s8, 128, %s1019_s11, [#allocation4]  }
 0x349   :  { %792 = dma.done.wait [#allocation4], 128  }
 0x34a   :  { %793 = vsyncadd [#allocation4], 4294967168 }
 0x34b   :  { %676 = vsyncpa [#allocation3], 1 }
 0x34c   :  { %677 = vsyncpa [#allocation6], 1 }
 0x34d   :  { %678 = vsyncpa [#allocation4], 1 }

</bundles_post_ra>
